<compile_context>
chip_gen: v5e
topology: v5e:2x2
jax: 0.10.0
libtpu: 0.0.40
codegen_flags: <defaults>
</compile_context>

<pallas_src>
import functools

import jax
import jax.numpy as jnp
from jax.experimental import pallas as pl
from jax.experimental.pallas import tpu as pltpu


# ----------------------------- kernel helpers ------------------------------

def _stage_padded(dst_ref, interior, pad, L):
    """Write `interior` (C, tB, L) into dst_ref (C, tB, Lp >= L+2*pad) at lane
    offset `pad`.  The (tiny) border columns are re-zeroed every grid step so
    the kernel carries no cross-iteration scratch state ("parallel"-safe)."""
    C, tB, Lp = dst_ref.shape
    cdt = dst_ref.dtype
    if pad > 0:
        dst_ref[:, :, 0:pad] = jnp.zeros((C, tB, pad), cdt)
    tail = Lp - (pad + L)
    if tail > 0:
        dst_ref[:, :, pad + L:Lp] = jnp.zeros((C, tB, tail), cdt)
    dst_ref[:, :, pad:pad + L] = interior


def _im2col_t(src_ref, K, stride, Lout):
    """Transposed im2col of a padded (C, tB, Lp) slab.

    Returns (K*C, tB*Lout): row = k*C + c (matches the transposed weight
    layout); the long tB*Lout dimension is last so it lands on MXU lanes.
    """
    C, tB, _ = src_ref.shape
    cols = []
    for k in range(K):
        if stride == 1:
            cols.append(src_ref[:, :, k:k + Lout])
        else:
            # Contiguous window + reshape/select instead of a strided lane
            # gather (the scratch is sized with the extra tail columns).
            win = src_ref[:, :, k:k + stride * Lout]
            cols.append(win.reshape(C, tB, Lout, stride)[..., 0])
    return jnp.concatenate(cols, axis=0).reshape(K * C, tB * Lout)


def _conv_block_kernel(x_ref, w1t_ref, b1_ref, w2t_ref, b2_ref, o_ref,
                       xp_ref, hp_ref, *, K, stride, pad, L, L1, L2,
                       C_in, C_hid):
    """One batch tile of the whole block, fully in VMEM, channels-first.

    x_ref  : (C_in, tB, L)        input tile, compute dtype (L on lanes)
    w1t_ref: (C_hid, K*C_in)      conv1 weights, transposed im2col layout
    b1_ref : (C_hid, 1)           conv1 bias (f32)
    w2t_ref: (C_in, K*C_hid)      conv2 weights, transposed im2col layout
    b2_ref : (C_in, 1)            conv2 bias (f32)
    o_ref  : (C_in, tB, L2)       output tile (lane-dense slab, L2 on lanes)
    xp_ref : (C_in, tB, >=L+2p)   VMEM scratch: padded input
    hp_ref : (C_hid, tB, >=L1+2p) VMEM scratch: padded hidden activations
    """
    tB = x_ref.shape[1]
    cdt = x_ref.dtype

    # pad=1 handled in scratch (no concat copy of the full slab, no f32 upcast).
    _stage_padded(xp_ref, x_ref[...], pad, L)

    # Conv1d #1, weights-stationary: (C_hid, K*C_in) x (K*C_in, tB*L1); the
    # long dim is on lanes so the epilogue and downstream stores are unmasked.
    a1t = _im2col_t(xp_ref, K, stride, L1)
    h = jnp.dot(w1t_ref[...], a1t, preferred_element_type=jnp.float32)
    h = jnp.maximum(h + b1_ref[...], 0.0)              # f32 epilogue (v5e-safe)
    # Dropout = identity in eval mode (see `training` guard in the wrapper).

    # Conv1d #2: hidden activations staged back to compute dtype, then padded.
    _stage_padded(hp_ref, h.astype(cdt).reshape(C_hid, tB, L1), pad, L1)
    a2t = _im2col_t(hp_ref, K, stride, L2)
    y = jnp.dot(w2t_ref[...], a2t, preferred_element_type=jnp.float32)
    y = jnp.maximum(y + b2_ref[...], 0.0)              # (C_in, tB*L2)

    # Single lane-dense slab store (channels-first); no per-batch transposes.
    o_ref[...] = y.reshape(C_in, tB, L2).astype(o_ref.dtype)


# ------------------------------ tiling logic -------------------------------

def _vmem_sizing():
    """Generation-aware scoped-VMEM sizing (v5e/v6e: 128 MiB, v7x: 64 MiB)."""
    cap = 64 * 1024 * 1024                           # conservative default
    try:
        info = pltpu.get_tpu_info()
        c = getattr(info, "vmem_capacity_bytes", None)
        if c:
            cap = int(c)
    except Exception:
        pass
    limit = min((3 * cap) // 4, 96 * 1024 * 1024)    # what we ask Mosaic for
    budget = (2 * limit) // 3                        # tile-sizing target
    return budget, limit


def _pick_tile_b(B, per_b_bytes, budget_bytes):
    """Largest legal batch tile that fits the VMEM budget.

    Legal tiles are divisors of B that are either B itself or a multiple of 8
    (second-minor block-dim constraint).  When a smaller legal tile fits, we
    prefer it over tile_b == B so the grid has >= 2 steps (v7x megacore).
    """
    legal = [d for d in range(1, B + 1)
             if B % d == 0 and (d == B or d % 8 == 0)]
    fitting = [d for d in legal if d * per_b_bytes <= budget_bytes]
    if not fitting:
        # TODO(synk): tile over L with a (K-1)+pad halo (second grid axis) so
        # very long sequences stay within VMEM instead of over-allocating.
        return min(legal)
    multi_step = [d for d in fitting if d < B]
    return max(multi_step) if multi_step else max(fitting)


# -------------------------------- wrapper -----------------------------------

def conv2d_block_forward(x, w1, b1, w2, b2, *, kernel_size, stride, pad=1,
                         dropout_rate=0.0, training=False,
                         compute_dtype=jnp.bfloat16, out_dtype=None,
                         channels_first_output=False,
                         vmem_budget_bytes=None, vmem_limit_bytes=None):
    """x: (B, L, C_in).  w1: (32, C_in, K), w2: (C_in, 32, K) (torch layout)."""
    if training and dropout_rate > 0.0:
        # TODO(synk): training-mode dropout (PRNG mask + 1/(1-p) scaling) is
        # not implemented; this kernel reproduces inference semantics only.
        raise NotImplementedError("Conv2DBlock Pallas kernel is inference-only.")

    B, L, C_in = x.shape
    C_hid = w1.shape[0]
    K = kernel_size
    out_dtype = compute_dtype if out_dtype is None else out_dtype

    L1 = (L + 2 * pad - K) // stride + 1             # conv1 output length
    L2 = (L1 + 2 * pad - K) // stride + 1            # conv2 output length
    # Scratch tail so stride>1 tap windows never read out of bounds.
    Lp1 = max(L + 2 * pad, (K - 1) + stride * L1)
    Lp2 = max(L1 + 2 * pad, (K - 1) + stride * L2)

    cb = jnp.dtype(compute_dtype).itemsize
    ob = jnp.dtype(out_dtype).itemsize

    budget, limit = _vmem_sizing()
    if vmem_budget_bytes is not None:
        budget = vmem_budget_bytes
    if vmem_limit_bytes is not None:
        limit = vmem_limit_bytes

    # Per-batch-element VMEM estimate (double-buffered I/O tiles, padded
    # scratch, im2col operands, f32 matmul results) + ~50% relayout margin.
    per_b = (2 * C_in * L * cb                       # input tile (x2 buffers)
             + C_in * Lp1 * cb                       # xp scratch
             + 2 * K * C_in * L1 * cb                # im2col #1 (+ copy)
             + C_hid * L1 * (4 + cb)                 # conv1 f32 result + cast
             + C_hid * Lp2 * cb                      # hp scratch
             + 2 * K * C_hid * L2 * cb               # im2col #2 (+ copy)
             + C_in * L2 * 4                         # conv2 f32 result
             + 2 * C_in * L2 * ob)                   # output tile (x2 buffers)
    per_b = (3 * per_b) // 2
    fixed = 2 * K * C_in * C_hid * cb + (C_hid + C_in) * 4

    tile_b = _pick_tile_b(B, per_b, budget - fixed)
    if vmem_limit_bytes is None:
        est_use = tile_b * per_b + fixed
        limit = min(max(limit, est_use + (4 << 20)), 112 * 1024 * 1024)

    # Plain-JAX glue: channels-first input, transposed im2col weight layout.
    x_cf = jnp.transpose(x, (2, 0, 1)).astype(compute_dtype)         # (C_in, B, L)
    w1t = jnp.transpose(w1, (0, 2, 1)).reshape(C_hid, K * C_in).astype(compute_dtype)
    w2t = jnp.transpose(w2, (0, 2, 1)).reshape(C_in, K * C_hid).astype(compute_dtype)
    b1c = b1.reshape(C_hid, 1).astype(jnp.float32)
    b2c = b2.reshape(C_in, 1).astype(jnp.float32)

    kernel = functools.partial(
        _conv_block_kernel, K=K, stride=stride, pad=pad,
        L=L, L1=L1, L2=L2, C_in=C_in, C_hid=C_hid)

    flops = 2 * B * (L1 * K * C_in * C_hid + L2 * K * C_hid * C_in)
    bytes_accessed = (B * C_in * L * cb + B * C_in * L2 * ob
                      + 2 * K * C_in * C_hid * cb + (C_hid + C_in) * 4)

    out_cf = pl.pallas_call(
        kernel,
        out_shape=jax.ShapeDtypeStruct((C_in, B, L2), out_dtype),
        grid=(B // tile_b,),
        in_specs=[
            pl.BlockSpec((C_in, tile_b, L), lambda i: (0, i, 0)),
            pl.BlockSpec((C_hid, K * C_in), lambda i: (0, 0)),
            pl.BlockSpec((C_hid, 1), lambda i: (0, 0)),
            pl.BlockSpec((C_in, K * C_hid), lambda i: (0, 0)),
            pl.BlockSpec((C_in, 1), lambda i: (0, 0)),
        ],
        out_specs=pl.BlockSpec((C_in, tile_b, L2), lambda i: (0, i, 0)),
        scratch_shapes=[pltpu.VMEM((C_in, tile_b, Lp1), compute_dtype),
                        pltpu.VMEM((C_hid, tile_b, Lp2), compute_dtype)],
        compiler_params=pltpu.CompilerParams(
            dimension_semantics=("parallel",),
            vmem_limit_bytes=int(limit)),
        cost_estimate=pl.CostEstimate(
            flops=int(flops), transcendentals=0,
            bytes_accessed=int(bytes_accessed)),
    )(x_cf, w1t, b1c, w2t, b2c)

    if channels_first_output:
        return out_cf                                # (C_in, B, L2), no extra pass
    # TODO(synk): if the consumer accepts channels-first output, pass
    # channels_first_output=True and skip this extra HBM read+write pass.
    return jnp.transpose(out_cf, (1, 2, 0))          # (B, L_out, C_in)


# ------------------------------- reference ----------------------------------

def _reference(x, w1, b1, w2, b2, *, kernel_size, stride, pad=1):
    """Pure-JAX f32 reference mirroring torch Conv1d semantics."""
    def conv1d(inp_blc, w_oik, b_o):
        xp = jnp.pad(inp_blc, ((0, 0), (pad, pad), (0, 0)))
        Kk = w_oik.shape[2]
        Lo = (xp.shape[1] - Kk) // stride + 1
        out = jnp.zeros((xp.shape[0], Lo, w_oik.shape[0]), jnp.float32)
        for k in range(Kk):
            sl = xp[:, k: k + stride * (Lo - 1) + 1: stride, :]
            out = out + jnp.einsum("blc,oc->blo", sl, w_oik[:, :, k])
        return out + b_o[None, None, :]

    h = jnp.maximum(conv1d(x, w1, b1), 0.0)
    y = jnp.maximum(conv1d(h, w2, b2), 0.0)
    return y


if __name__ == "__main__":
    # Small shapes consistent with the module's forward.
    B, L, C_in = 2, 16, 4
    kernel_size, stride, dropout_rate = 3, 1, 0.1
    C_hid = 32

    key = jax.random.PRNGKey(0)
    kx, kw1, kb1, kw2, kb2 = jax.random.split(key, 5)

    x = jax.random.normal(kx, (B, L, C_in), dtype=jnp.float32)

    # PyTorch Conv1d default init: U(-1/sqrt(fan_in), 1/sqrt(fan_in)).
    bound1 = 1.0 / jnp.sqrt(C_in * kernel_size)
    w1 = jax.random.uniform(kw1, (C_hid, C_in, kernel_size),
                            minval=-bound1, maxval=bound1, dtype=jnp.float32)
    b1 = jax.random.uniform(kb1, (C_hid,),
                            minval=-bound1, maxval=bound1, dtype=jnp.float32)
    bound2 = 1.0 / jnp.sqrt(C_hid * kernel_size)
    w2 = jax.random.uniform(kw2, (C_in, C_hid, kernel_size),
                            minval=-bound2, maxval=bound2, dtype=jnp.float32)
    b2 = jax.random.uniform(kb2, (C_in,),
                            minval=-bound2, maxval=bound2, dtype=jnp.float32)

    ref = _reference(x, w1, b1, w2, b2, kernel_size=kernel_size, stride=stride)

    # Exactness check with f32 compute.
    out_f32 = conv2d_block_forward(x, w1, b1, w2, b2,
                                   kernel_size=kernel_size, stride=stride,
                                   dropout_rate=dropout_rate,
                                   compute_dtype=jnp.float32)
    out_f32 = jax.block_until_ready(out_f32)
    assert out_f32.shape == ref.shape, (out_f32.shape, ref.shape)
    err_f32 = float(jnp.max(jnp.abs(out_f32 - ref)))
    assert err_f32 < 1e-4, err_f32

    # Default production path: bf16 data path, f32 accumulation, bf16 output.
    out_bf16 = conv2d_block_forward(x, w1, b1, w2, b2,
                                    kernel_size=kernel_size, stride=stride,
                                    dropout_rate=dropout_rate,
                                    compute_dtype=jnp.bfloat16)
    out_bf16 = jax.block_until_ready(out_bf16)
    assert out_bf16.shape == ref.shape, (out_bf16.shape, ref.shape)
    err_bf16 = float(jnp.max(jnp.abs(out_bf16.astype(jnp.float32) - ref)))
    assert err_bf16 < 1e-1, err_bf16

    print("KERNEL_OK")
</pallas_src>

<mosaic_0001>
module attributes {stable_mosaic.version = 11 : i64} {
  func.func @_conv_block_kernel(%arg0: i32, %arg1: memref<4x2x16xf32, #tpu.memory_space<vmem>>, %arg2: memref<32x12xf32, #tpu.memory_space<vmem>>, %arg3: memref<32x1xf32, #tpu.memory_space<vmem>>, %arg4: memref<4x96xf32, #tpu.memory_space<vmem>>, %arg5: memref<4x1xf32, #tpu.memory_space<vmem>>, %arg6: memref<4x2x16xf32, #tpu.memory_space<vmem>>, %arg7: memref<4x2x18xf32, #tpu.memory_space<vmem>>, %arg8: memref<32x2x18xf32, #tpu.memory_space<vmem>>) attributes {dimension_semantics = [#tpu.dimension_semantics<parallel>], iteration_bounds = array<i64: 1>, scalar_prefetch = 0 : i64, scratch_operands = 2 : i64, tpu.core_type = #tpu.core_type<tc>, window_params = [{transform_indices = @transform_0, window_bounds = array<i64: 4, 2, 16>}, {pipeline_mode = #tpu.pipeline_mode<synchronous>, transform_indices = @transform_1, window_bounds = array<i64: 32, 12>}, {pipeline_mode = #tpu.pipeline_mode<synchronous>, transform_indices = @transform_2, window_bounds = array<i64: 32, 1>}, {pipeline_mode = #tpu.pipeline_mode<synchronous>, transform_indices = @transform_3, window_bounds = array<i64: 4, 96>}, {pipeline_mode = #tpu.pipeline_mode<synchronous>, transform_indices = @transform_4, window_bounds = array<i64: 4, 1>}, {transform_indices = @transform_5, window_bounds = array<i64: 4, 2, 16>}]} {
    %c0 = arith.constant 0 : index
    %c0_0 = arith.constant 0 : index
    %c0_1 = arith.constant 0 : index
    %0 = vector.load %arg1[%c0, %c0_0, %c0_1] : memref<4x2x16xf32, #tpu.memory_space<vmem>>, vector<4x2x16xf32>
    %cst = arith.constant 0.000000e+00 : f32
    %1 = vector.broadcast %cst : f32 to vector<4x2x1xf32>
    %c0_2 = arith.constant 0 : index
    %c0_3 = arith.constant 0 : index
    %c0_4 = arith.constant 0 : index
    %2 = vector.load %arg7[%c0_2, %c0_3, %c0_4] : memref<4x2x18xf32, #tpu.memory_space<vmem>>, vector<4x2x1xf32>
    tpu.vector_store %arg7[%c0_2, %c0_3, %c0_4], %1 {strides = array<i32>} : memref<4x2x18xf32, #tpu.memory_space<vmem>>, vector<4x2x1xf32>,
    %cst_5 = arith.constant 0.000000e+00 : f32
    %3 = vector.broadcast %cst_5 : f32 to vector<4x2x1xf32>
    %c0_6 = arith.constant 0 : index
    %c0_7 = arith.constant 0 : index
    %c17 = arith.constant 17 : index
    %4 = vector.load %arg7[%c0_6, %c0_7, %c17] : memref<4x2x18xf32, #tpu.memory_space<vmem>>, vector<4x2x1xf32>
    tpu.vector_store %arg7[%c0_6, %c0_7, %c17], %3 {strides = array<i32>} : memref<4x2x18xf32, #tpu.memory_space<vmem>>, vector<4x2x1xf32>,
    %c0_8 = arith.constant 0 : index
    %c0_9 = arith.constant 0 : index
    %c1 = arith.constant 1 : index
    %5 = vector.load %arg7[%c0_8, %c0_9, %c1] : memref<4x2x18xf32, #tpu.memory_space<vmem>>, vector<4x2x16xf32>
    tpu.vector_store %arg7[%c0_8, %c0_9, %c1], %0 {strides = array<i32>} : memref<4x2x18xf32, #tpu.memory_space<vmem>>, vector<4x2x16xf32>,
    %c0_10 = arith.constant 0 : index
    %c0_11 = arith.constant 0 : index
    %c0_12 = arith.constant 0 : index
    %6 = vector.load %arg7[%c0_10, %c0_11, %c0_12] : memref<4x2x18xf32, #tpu.memory_space<vmem>>, vector<4x2x16xf32>
    %c0_13 = arith.constant 0 : index
    %c0_14 = arith.constant 0 : index
    %c1_15 = arith.constant 1 : index
    %7 = vector.load %arg7[%c0_13, %c0_14, %c1_15] : memref<4x2x18xf32, #tpu.memory_space<vmem>>, vector<4x2x16xf32>
    %c0_16 = arith.constant 0 : index
    %c0_17 = arith.constant 0 : index
    %c2 = arith.constant 2 : index
    %8 = vector.load %arg7[%c0_16, %c0_17, %c2] : memref<4x2x18xf32, #tpu.memory_space<vmem>>, vector<4x2x16xf32>
    %9 = tpu.concatenate %6, %7, %8 in 0 : vector<4x2x16xf32>, vector<4x2x16xf32>, vector<4x2x16xf32> -> vector<12x2x16xf32>
    %10 = vector.shape_cast %9 : vector<12x2x16xf32> to vector<12x32xf32>
    %c0_18 = arith.constant 0 : index
    %c0_19 = arith.constant 0 : index
    %11 = vector.load %arg2[%c0_18, %c0_19] : memref<32x12xf32, #tpu.memory_space<vmem>>, vector<32x12xf32>
    %cst_20 = arith.constant dense<0.000000e+00> : vector<32x32xf32>
    %12 = tpu.matmul %11, %10, %cst_20 {dimension_numbers = #tpu.dot_dimension_numbers<[1], [0], [0], [1], [0, 0, 1, 1], [], []>} : vector<32x12xf32>, vector<12x32xf32>, vector<32x32xf32> -> vector<32x32xf32>
    %c0_21 = arith.constant 0 : index
    %c0_22 = arith.constant 0 : index
    %13 = vector.load %arg3[%c0_21, %c0_22] : memref<32x1xf32, #tpu.memory_space<vmem>>, vector<32x1xf32>
    %14 = vector.broadcast %13 : vector<32x1xf32> to vector<32x32xf32>
    %15 = arith.addf %12, %14 : vector<32x32xf32>
    %cst_23 = arith.constant 0.000000e+00 : f32
    %16 = vector.broadcast %cst_23 : f32 to vector<32x32xf32>
    %17 = arith.maximumf %15, %16 : vector<32x32xf32>
    %18 = vector.shape_cast %17 : vector<32x32xf32> to vector<32x2x16xf32>
    %cst_24 = arith.constant 0.000000e+00 : f32
    %19 = vector.broadcast %cst_24 : f32 to vector<32x2x1xf32>
    %c0_25 = arith.constant 0 : index
    %c0_26 = arith.constant 0 : index
    %c0_27 = arith.constant 0 : index
    %20 = vector.load %arg8[%c0_25, %c0_26, %c0_27] : memref<32x2x18xf32, #tpu.memory_space<vmem>>, vector<32x2x1xf32>
    tpu.vector_store %arg8[%c0_25, %c0_26, %c0_27], %19 {strides = array<i32>} : memref<32x2x18xf32, #tpu.memory_space<vmem>>, vector<32x2x1xf32>,
    %cst_28 = arith.constant 0.000000e+00 : f32
    %21 = vector.broadcast %cst_28 : f32 to vector<32x2x1xf32>
    %c0_29 = arith.constant 0 : index
    %c0_30 = arith.constant 0 : index
    %c17_31 = arith.constant 17 : index
    %22 = vector.load %arg8[%c0_29, %c0_30, %c17_31] : memref<32x2x18xf32, #tpu.memory_space<vmem>>, vector<32x2x1xf32>
    tpu.vector_store %arg8[%c0_29, %c0_30, %c17_31], %21 {strides = array<i32>} : memref<32x2x18xf32, #tpu.memory_space<vmem>>, vector<32x2x1xf32>,
    %c0_32 = arith.constant 0 : index
    %c0_33 = arith.constant 0 : index
    %c1_34 = arith.constant 1 : index
    %23 = vector.load %arg8[%c0_32, %c0_33, %c1_34] : memref<32x2x18xf32, #tpu.memory_space<vmem>>, vector<32x2x16xf32>
    tpu.vector_store %arg8[%c0_32, %c0_33, %c1_34], %18 {strides = array<i32>} : memref<32x2x18xf32, #tpu.memory_space<vmem>>, vector<32x2x16xf32>,
    %c0_35 = arith.constant 0 : index
    %c0_36 = arith.constant 0 : index
    %c0_37 = arith.constant 0 : index
    %24 = vector.load %arg8[%c0_35, %c0_36, %c0_37] : memref<32x2x18xf32, #tpu.memory_space<vmem>>, vector<32x2x16xf32>
    %c0_38 = arith.constant 0 : index
    %c0_39 = arith.constant 0 : index
    %c1_40 = arith.constant 1 : index
    %25 = vector.load %arg8[%c0_38, %c0_39, %c1_40] : memref<32x2x18xf32, #tpu.memory_space<vmem>>, vector<32x2x16xf32>
    %c0_41 = arith.constant 0 : index
    %c0_42 = arith.constant 0 : index
    %c2_43 = arith.constant 2 : index
    %26 = vector.load %arg8[%c0_41, %c0_42, %c2_43] : memref<32x2x18xf32, #tpu.memory_space<vmem>>, vector<32x2x16xf32>
    %27 = tpu.concatenate %24, %25, %26 in 0 : vector<32x2x16xf32>, vector<32x2x16xf32>, vector<32x2x16xf32> -> vector<96x2x16xf32>
    %28 = vector.shape_cast %27 : vector<96x2x16xf32> to vector<96x32xf32>
    %c0_44 = arith.constant 0 : index
    %c0_45 = arith.constant 0 : index
    %29 = vector.load %arg4[%c0_44, %c0_45] : memref<4x96xf32, #tpu.memory_space<vmem>>, vector<4x96xf32>
    %cst_46 = arith.constant dense<0.000000e+00> : vector<4x32xf32>
    %30 = tpu.matmul %29, %28, %cst_46 {dimension_numbers = #tpu.dot_dimension_numbers<[1], [0], [0], [1], [0, 0, 1, 1], [], []>} : vector<4x96xf32>, vector<96x32xf32>, vector<4x32xf32> -> vector<4x32xf32>
    %c0_47 = arith.constant 0 : index
    %c0_48 = arith.constant 0 : index
    %31 = vector.load %arg5[%c0_47, %c0_48] : memref<4x1xf32, #tpu.memory_space<vmem>>, vector<4x1xf32>
    %32 = vector.broadcast %31 : vector<4x1xf32> to vector<4x32xf32>
    %33 = arith.addf %30, %32 : vector<4x32xf32>
    %cst_49 = arith.constant 0.000000e+00 : f32
    %34 = vector.broadcast %cst_49 : f32 to vector<4x32xf32>
    %35 = arith.maximumf %33, %34 : vector<4x32xf32>
    %36 = vector.shape_cast %35 : vector<4x32xf32> to vector<4x2x16xf32>
    %c0_50 = arith.constant 0 : index
    %c0_51 = arith.constant 0 : index
    %c0_52 = arith.constant 0 : index
    %37 = vector.load %arg6[%c0_50, %c0_51, %c0_52] : memref<4x2x16xf32, #tpu.memory_space<vmem>>, vector<4x2x16xf32>
    tpu.vector_store %arg6[%c0_50, %c0_51, %c0_52], %36 {strides = array<i32>} : memref<4x2x16xf32, #tpu.memory_space<vmem>>, vector<4x2x16xf32>,
    return
  }
  func.func @transform_0(%arg0: i32) -> (i32, i32, i32) {
    %c0_i32 = arith.constant 0 : i32
    %c0_i32_0 = arith.constant 0 : i32
    %c0_i32_1 = arith.constant 0 : i32
    return %c0_i32, %arg0, %c0_i32_0 : i32, i32, i32
  }
  func.func @transform_1(%arg0: i32) -> (i32, i32) {
    %c0_i32 = arith.constant 0 : i32
    %c0_i32_0 = arith.constant 0 : i32
    %c0_i32_1 = arith.constant 0 : i32
    return %c0_i32, %c0_i32_0 : i32, i32
  }
  func.func @transform_2(%arg0: i32) -> (i32, i32) {
    %c0_i32 = arith.constant 0 : i32
    %c0_i32_0 = arith.constant 0 : i32
    %c0_i32_1 = arith.constant 0 : i32
    return %c0_i32, %c0_i32_0 : i32, i32
  }
  func.func @transform_3(%arg0: i32) -> (i32, i32) {
    %c0_i32 = arith.constant 0 : i32
    %c0_i32_0 = arith.constant 0 : i32
    %c0_i32_1 = arith.constant 0 : i32
    return %c0_i32, %c0_i32_0 : i32, i32
  }
  func.func @transform_4(%arg0: i32) -> (i32, i32) {
    %c0_i32 = arith.constant 0 : i32
    %c0_i32_0 = arith.constant 0 : i32
    %c0_i32_1 = arith.constant 0 : i32
    return %c0_i32, %c0_i32_0 : i32, i32
  }
  func.func @transform_5(%arg0: i32) -> (i32, i32, i32) {
    %c0_i32 = arith.constant 0 : i32
    %c0_i32_0 = arith.constant 0 : i32
    %c0_i32_1 = arith.constant 0 : i32
    return %c0_i32, %arg0, %c0_i32_0 : i32, i32, i32
  }
}

</mosaic_0001>

<bundles_post_ra>
// kernel: tpu_custom_call.1
= control target key start
LH: loop header
LB: loop body
LE: loop exit
PB: predicated region body
PF: predicated region fallthrough
CT: control target
= control target key end

     0   :  { %s1814_s22 = smov 1   ;;  %vm25_vm0 = vcmask 1024   ;;  %v1815_v2 = vmov 0.0   ;;  %vm30_vm1 = vcmask 140424   ;;  %s2657_s0 = inlined_call_operand.vmem [shape: f32[4,2,16], index: 0, kind: input, shape index: {}]   ;;  %s2658_s1 = inlined_call_operand.vmem [shape: f32[32,12], index: 1, kind: input, shape index: {}]   ;;  %s2659_s2 = inlined_call_operand.vmem [shape: f32[32,1], index: 2, kind: input, shape index: {}]   ;;  %s2660_s3 = inlined_call_operand.vmem [shape: f32[4,96], index: 3, kind: input, shape index: {}]   ;;  %s2661_s4 = inlined_call_operand.vmem [shape: f32[4,1], index: 4, kind: input, shape index: {}]   ;;  %s2662_s5 = inlined_call_operand.hbm [shape: f32[4,2,16], index: 5, kind: output, shape index: {}]  }
   0x1   :  { %v24_v0 = vld [vmem:[%s2657_s0 + $0x6] sm:$0x3]  ;;  %v23_v1 = vld [vmem:[%s2657_s0 + $0x4] sm:$0x3]  ;;  %29 = vst.msk [vmem:[#allocation2 + $0x6] sm:$0x3] %vm25_vm0, %v1815_v2 }
   0x2   :  { %45 = vrot.lane.b32.xlu0 %v24_v0, %s1814_s22  ;;  %43 = vrot.lane.b32.xlu1 %v23_v1, %s1814_s22 }
   0x3   :  { %10 = vsyncpa [#allocation5], 0  ;;  %34 = vst.msk [vmem:[#allocation2 + $0x6] sm:$0x3] %vm30_vm1, %v1815_v2  ;;  %v22_v3 = vld [vmem:[%s2657_s0 + $0x2] sm:$0x3] }
   0x4   :  { %26 = vst.msk [vmem:[#allocation2] sm:$0x3] %vm25_vm0, %v1815_v2  ;;  %v21_v4 = vld [vmem:[%s2657_s0] sm:$0x3]  ;;  %vm51_vm2 = vcmask 132104   ;;  %s1816_s0 = smov 126  }
   0x5   :  { %27 = vst.msk [vmem:[#allocation2 + $0x2] sm:$0x3] %vm25_vm0, %v1815_v2  ;;  %v1817_v11 = vmov 1983009808   ;;  %vm89_vm3 = vcmask 1047556   ;;  %s1818_s27 = smov 127  }
   0x6   :  { %28 = vst.msk [vmem:[#allocation2 + $0x4] sm:$0x3] %vm25_vm0, %v1815_v2  ;;  %v92_v12 = vunpack.c.l.s4 %v1817_v11  ;;  %v1819_v33 = vmov 1934713408   ;;  %s1820_s28 = smov 16   ;;  %v166_v62 = vld [vmem:[%s2659_s2 + $0x10] sm:$0xff] }
   0x7   :  { %462 = vst.msk [vmem:[#allocation3] sm:$0x3] %vm25_vm0, %v1815_v2  ;;  %v116_v34 = vunpack.c.l.s4 %v1819_v33  ;;  %v1821_v63 = vmov 0   ;;  %v164_v0 = vld [vmem:[%s2659_s2] sm:$0xff]  ;;  %v167_v1 = vld [vmem:[%s2659_s2 + $0x18] sm:$0xff]  ;;  %vm201_vm4 = vcmask 1043456  }
   0x8   :  { %463 = vst.msk [vmem:[#allocation3 + $0x2] sm:$0x3] %vm25_vm0, %v1815_v2  ;;  %v2022_v14 = vunpack.c.0.s8 %v92_v12  ;;  %1596 = vset.pattern.permute.xlu1 %v1821_v63  ;;  %1595 = vset.pattern.permute.xlu0 %v1821_v63  ;;  %vm157_vm5 = vcmask 130048   ;;  %vm188_vm6 = vcmask 97280   ;;  %v161_v11 = vld [vmem:[%s2658_s1 + $0x8] sm:$0xff]  ;;  %v163_v12 = vld [vmem:[%s2658_s1 + $0x18] sm:$0xff] }
   0x9   :  { %464 = vst.msk [vmem:[#allocation3 + $0x4] sm:$0x3] %vm25_vm0, %v1815_v2  ;;  %v2037_v39 = vunpack.c.0.s8 %v116_v34  ;;  %1597 = vset.pattern.permute.xlu2 %v1821_v63  ;;  %s1822_s19 = smov 112   ;;  %vm1489_vm7 = vcmask 785408   ;;  %vm1542_vm8 = vcmask 123904   ;;  %s1553_s25 = sshll.u32 %s2662_s5, 4  ;;  %s1554_s25 = int_to_ptr.hbm [resolvable:$true] %s1553_s25 }
   0xa   :  { %41 = vrot.lane.b32.xlu0 %v22_v3, %s1814_s22  ;;  %39 = vrot.lane.b32.xlu1 %v21_v4, %s1814_s22  ;;  %465 = vst.msk [vmem:[#allocation3 + $0x6] sm:$0x3] %vm25_vm0, %v1815_v2  ;;  %s1824_s26 = smov 32   ;;  %s1825_s5 = smov 2  }
   0xb   :  { %466 = vst.msk [vmem:[#allocation3 + $0x8] sm:$0x3] %vm25_vm0, %v1815_v2 }
   0xc   :  { %467 = vst.msk [vmem:[#allocation3 + $0xa] sm:$0x3] %vm25_vm0, %v1815_v2 }
   0xd   :  { %468 = vst.msk [vmem:[#allocation3 + $0xc] sm:$0x3] %vm25_vm0, %v1815_v2 }
   0xe   :  { %469 = vst.msk [vmem:[#allocation3 + $0xe] sm:$0x3] %vm25_vm0, %v1815_v2 }
   0xf   :  { %470 = vst.msk [vmem:[#allocation3 + $0x10] sm:$0x3] %vm25_vm0, %v1815_v2 }
  0x10   :  { %471 = vst.msk [vmem:[#allocation3 + $0x12] sm:$0x3] %vm25_vm0, %v1815_v2 }
  0x11   :  { %472 = vst.msk [vmem:[#allocation3 + $0x14] sm:$0x3] %vm25_vm0, %v1815_v2 }
  0x12   :  { %473 = vst.msk [vmem:[#allocation3 + $0x16] sm:$0x3] %vm25_vm0, %v1815_v2 }
  0x13   :  { %474 = vst.msk [vmem:[#allocation3 + $0x18] sm:$0x3] %vm25_vm0, %v1815_v2 }
  0x14   :  { %475 = vst.msk [vmem:[#allocation3 + $0x1a] sm:$0x3] %vm25_vm0, %v1815_v2 }
  0x15   :  { %476 = vst.msk [vmem:[#allocation3 + $0x1c] sm:$0x3] %vm25_vm0, %v1815_v2 }
  0x16   :  { %477 = vst.msk [vmem:[#allocation3 + $0x1e] sm:$0x3] %vm25_vm0, %v1815_v2 }
  0x17   :  { %478 = vst.msk [vmem:[#allocation3 + $0x20] sm:$0x3] %vm25_vm0, %v1815_v2 }
  0x18   :  { %479 = vst.msk [vmem:[#allocation3 + $0x22] sm:$0x3] %vm25_vm0, %v1815_v2 }
  0x19   :  { %480 = vst.msk [vmem:[#allocation3 + $0x24] sm:$0x3] %vm25_vm0, %v1815_v2 }
  0x1a   :  { %481 = vst.msk [vmem:[#allocation3 + $0x26] sm:$0x3] %vm25_vm0, %v1815_v2 }
  0x1b   :  { %482 = vst.msk [vmem:[#allocation3 + $0x28] sm:$0x3] %vm25_vm0, %v1815_v2 }
  0x1c   :  { %483 = vst.msk [vmem:[#allocation3 + $0x2a] sm:$0x3] %vm25_vm0, %v1815_v2 }
  0x1d   :  { %484 = vst.msk [vmem:[#allocation3 + $0x2c] sm:$0x3] %vm25_vm0, %v1815_v2 }
  0x1e   :  { %485 = vst.msk [vmem:[#allocation3 + $0x2e] sm:$0x3] %vm25_vm0, %v1815_v2 }
  0x1f   :  { %486 = vst.msk [vmem:[#allocation3 + $0x30] sm:$0x3] %vm25_vm0, %v1815_v2 }
  0x20   :  { %487 = vst.msk [vmem:[#allocation3 + $0x32] sm:$0x3] %vm25_vm0, %v1815_v2 }
  0x21   :  { %488 = vst.msk [vmem:[#allocation3 + $0x34] sm:$0x3] %vm25_vm0, %v1815_v2 }
  0x22   :  { %489 = vst.msk [vmem:[#allocation3 + $0x36] sm:$0x3] %vm25_vm0, %v1815_v2 }
  0x23   :  { %490 = vst.msk [vmem:[#allocation3 + $0x38] sm:$0x3] %vm25_vm0, %v1815_v2 }
  0x24   :  { %491 = vst.msk [vmem:[#allocation3 + $0x3a] sm:$0x3] %vm25_vm0, %v1815_v2 }
  0x25   :  { %492 = vst.msk [vmem:[#allocation3 + $0x3c] sm:$0x3] %vm25_vm0, %v1815_v2 }
  0x26   :  { %493 = vst.msk [vmem:[#allocation3 + $0x3e] sm:$0x3] %vm25_vm0, %v1815_v2 }
  0x27   :  { %33 = vst.msk [vmem:[#allocation2 + $0x4] sm:$0x3] %vm30_vm1, %v1815_v2 }
  0x28   :  { %31 = vst.msk [vmem:[#allocation2] sm:$0x3] %vm30_vm1, %v1815_v2 }
  0x29   :  { %32 = vst.msk [vmem:[#allocation2 + $0x2] sm:$0x3] %vm30_vm1, %v1815_v2 }
  0x2a   :  { %494 = vst.msk [vmem:[#allocation3] sm:$0x3] %vm30_vm1, %v1815_v2 }
  0x2b   :  { %495 = vst.msk [vmem:[#allocation3 + $0x2] sm:$0x3] %vm30_vm1, %v1815_v2 }
  0x2c   :  { %496 = vst.msk [vmem:[#allocation3 + $0x4] sm:$0x3] %vm30_vm1, %v1815_v2 }
  0x2d   :  { %497 = vst.msk [vmem:[#allocation3 + $0x6] sm:$0x3] %vm30_vm1, %v1815_v2 }
  0x2e   :  { %498 = vst.msk [vmem:[#allocation3 + $0x8] sm:$0x3] %vm30_vm1, %v1815_v2 }
  0x2f   :  { %499 = vst.msk [vmem:[#allocation3 + $0xa] sm:$0x3] %vm30_vm1, %v1815_v2 }
  0x30   :  { %500 = vst.msk [vmem:[#allocation3 + $0xc] sm:$0x3] %vm30_vm1, %v1815_v2 }
  0x31   :  { %501 = vst.msk [vmem:[#allocation3 + $0xe] sm:$0x3] %vm30_vm1, %v1815_v2 }
  0x32   :  { %502 = vst.msk [vmem:[#allocation3 + $0x10] sm:$0x3] %vm30_vm1, %v1815_v2 }
  0x33   :  { %503 = vst.msk [vmem:[#allocation3 + $0x12] sm:$0x3] %vm30_vm1, %v1815_v2 }
  0x34   :  { %504 = vst.msk [vmem:[#allocation3 + $0x14] sm:$0x3] %vm30_vm1, %v1815_v2 }
  0x35   :  { %505 = vst.msk [vmem:[#allocation3 + $0x16] sm:$0x3] %vm30_vm1, %v1815_v2 }
  0x36   :  { %506 = vst.msk [vmem:[#allocation3 + $0x18] sm:$0x3] %vm30_vm1, %v1815_v2 }
  0x37   :  { %507 = vst.msk [vmem:[#allocation3 + $0x1a] sm:$0x3] %vm30_vm1, %v1815_v2 }
  0x38   :  { %508 = vst.msk [vmem:[#allocation3 + $0x1c] sm:$0x3] %vm30_vm1, %v1815_v2 }
  0x39   :  { %509 = vst.msk [vmem:[#allocation3 + $0x1e] sm:$0x3] %vm30_vm1, %v1815_v2 }
  0x3a   :  { %510 = vst.msk [vmem:[#allocation3 + $0x20] sm:$0x3] %vm30_vm1, %v1815_v2 }
  0x3b   :  { %511 = vst.msk [vmem:[#allocation3 + $0x22] sm:$0x3] %vm30_vm1, %v1815_v2 }
  0x3c   :  { %512 = vst.msk [vmem:[#allocation3 + $0x24] sm:$0x3] %vm30_vm1, %v1815_v2 }
  0x3d   :  { %513 = vst.msk [vmem:[#allocation3 + $0x26] sm:$0x3] %vm30_vm1, %v1815_v2 }
  0x3e   :  { %514 = vst.msk [vmem:[#allocation3 + $0x28] sm:$0x3] %vm30_vm1, %v1815_v2 }
  0x3f   :  { %515 = vst.msk [vmem:[#allocation3 + $0x2a] sm:$0x3] %vm30_vm1, %v1815_v2 }
  0x40   :  { %516 = vst.msk [vmem:[#allocation3 + $0x2c] sm:$0x3] %vm30_vm1, %v1815_v2 }
  0x41   :  { %517 = vst.msk [vmem:[#allocation3 + $0x2e] sm:$0x3] %vm30_vm1, %v1815_v2 }
  0x42   :  { %518 = vst.msk [vmem:[#allocation3 + $0x30] sm:$0x3] %vm30_vm1, %v1815_v2 }
  0x43   :  { %519 = vst.msk [vmem:[#allocation3 + $0x32] sm:$0x3] %vm30_vm1, %v1815_v2 }
  0x44   :  { %520 = vst.msk [vmem:[#allocation3 + $0x34] sm:$0x3] %vm30_vm1, %v1815_v2 }
  0x45   :  { %521 = vst.msk [vmem:[#allocation3 + $0x36] sm:$0x3] %vm30_vm1, %v1815_v2 }
  0x46   :  { %522 = vst.msk [vmem:[#allocation3 + $0x38] sm:$0x3] %vm30_vm1, %v1815_v2 }
  0x47   :  { %523 = vst.msk [vmem:[#allocation3 + $0x3a] sm:$0x3] %vm30_vm1, %v1815_v2 }
  0x48   :  { %524 = vst.msk [vmem:[#allocation3 + $0x3c] sm:$0x3] %vm30_vm1, %v1815_v2 }
  0x49   :  { %525 = vst.msk [vmem:[#allocation3 + $0x3e] sm:$0x3] %vm30_vm1, %v1815_v2  ;;  %v165_v2 = vld [vmem:[%s2659_s2 + $0x8] sm:$0xff] }
  0x74   :  { %v46_v5 = vpop.permute.xlu0 %45  ;;  %v44_v6 = vpop.permute.xlu1 %43 }
  0x75   :  { %55 = vst.msk [vmem:[#allocation2 + $0x6] sm:$0x3] %vm51_vm2, %v46_v5 }
  0x76   :  { %54 = vst.msk [vmem:[#allocation2 + $0x4] sm:$0x3] %vm51_vm2, %v44_v6 }
  0x7c   :  { %v42_v7 = vpop.permute.xlu0 %41  ;;  %v40_v8 = vpop.permute.xlu1 %39  ;;  %v59_v9 = vld [vmem:[#allocation2 + $0x6] sm:$0x3] }
  0x7d   :  { %53 = vst.msk [vmem:[#allocation2 + $0x2] sm:$0x3] %vm51_vm2, %v42_v7  ;;  %v58_v10 = vld [vmem:[#allocation2 + $0x4] sm:$0x3]  ;;  %82 = vrot.lane.b32.xlu2 %v59_v9, %s1816_s0  ;;  %v95_v13 = vrot.slane %v59_v9, 4 }
  0x7e   :  { %52 = vst.msk [vmem:[#allocation2] sm:$0x3] %vm51_vm2, %v40_v8  ;;  %80 = vrot.lane.b32.xlu0 %v58_v10, %s1816_s0  ;;  %v88_v15 = vrot.slane %v58_v10, 4  ;;  %v160_v8 = vld [vmem:[%s2658_s1] sm:$0xff] }
  0x84   :  { %v57_v16 = vld [vmem:[#allocation2 + $0x2] sm:$0x3] }
  0x85   :  { %v1585_v17 = vpack.i.bf16 %v57_v16, %v59_v9  ;;  %v96_v18 = vsel %vm89_vm3, %v95_v13, %v57_v16  ;;  %v56_v19 = vld [vmem:[#allocation2] sm:$0x3]  ;;  %78 = vrot.lane.b32.xlu2 %v57_v16, %s1816_s0  ;;  %v162_v9 = vld [vmem:[%s2658_s1 + $0x10] sm:$0xff] }
  0x86   :  { %v100_v20 = vperm.slane %v96_v18, %v2022_v14  ;;  %v1590_v21 = vpack.i.bf16 %v56_v19, %v58_v10  ;;  %v90_v22 = vsel %vm89_vm3, %v88_v15, %v56_v19 }
  0x87   :  { %1586 = vrot.lane.b32.xlu1 %v1585_v17, %s1818_s27  ;;  %v94_v24 = vperm.slane %v90_v22, %v2022_v14 }
  0x88   :  { %v113_v23 = vrot.slane %v100_v20, 4  ;;  %1591 = vrot.lane.b32.xlu0 %v1590_v21, %s1818_s27 }
  0x8a   :  { %v114_v25 = vsel %vm89_vm3, %v113_v23, %v94_v24 }
  0x8b   :  { %v118_v55 = vperm.slane %v114_v25, %v2037_v39 }
  0x8d   :  { %76 = vrot.lane.b32.xlu2 %v56_v19, %s1816_s0  ;;  %v127_v60 = vrot.slane %v118_v55, 4 }
  0x90   :  { %185 = vperm.xlu0 %1595, %v167_v1  }
  0xd7   :  { %v83_v26 = vpop.permute.xlu2 %82 }
  0xd8   :  { %v135_v27 = vrot.slane %v83_v26, 4 }
  0xdf   :  { %v79_v28 = vpop.permute.xlu2 %78 }
  0xe0   :  { %v136_v29 = vsel %vm89_vm3, %v135_v27, %v79_v28 }
  0xe1   :  { %v140_v30 = vperm.slane %v136_v29, %v2022_v14 }
  0xe3   :  { %v141_v37 = vrot.slane %v140_v30, 4 }
  0xe7   :  { %v77_v35 = vpop.permute.xlu2 %76 }
  0xf0   :  { %v81_v31 = vpop.permute.xlu0 %80 }
  0xf1   :  { %v129_v32 = vrot.slane %v81_v31, 4 }
  0xf3   :  { %v130_v36 = vsel %vm89_vm3, %v129_v32, %v77_v35 }
  0xf4   :  { %v134_v38 = vperm.slane %v130_v36, %v2022_v14 }
  0xf6   :  { %v142_v40 = vsel %vm89_vm3, %v141_v37, %v134_v38 }
  0xf7   :  { %v146_v41 = vperm.slane %v142_v40, %v2037_v39 }
  0xf9   :  { %v1587_v42 = vpop.permute.xlu1 %1586  ;;  %v147_v43 = vrot.slane %v146_v41, 4 }
  0xfa   :  { %v1592_v44 = vpop.permute.xlu0 %1591  ;;  %v1589_v45 = vunpack.i.h.bf16 %v1587_v42  ;;  %v1588_v46 = vunpack.i.l.bf16 %v1587_v42 }
  0xfb   :  { %v1593_v47 = vunpack.i.l.bf16 %v1592_v44  ;;  %v148_v48 = vsel %vm89_vm3, 0.0, %v147_v43  ;;  %v1594_v50 = vunpack.i.h.bf16 %v1592_v44 }
  0xfc   :  { %v107_v49 = vrot.slane %v1588_v46, 4  ;;  %153 = vrot.lane.b32.xlu1 %v148_v48, %s1820_s28 }
  0xfd   :  { %v101_v51 = vrot.slane %v1593_v47, 4 }
  0xfe   :  { %v108_v52 = vsel %vm89_vm3, %v107_v49, %v1589_v45 }
  0xff   :  { %v102_v53 = vsel %vm89_vm3, %v101_v51, %v1594_v50  ;;  %v112_v54 = vperm.slane %v108_v52, %v2022_v14 }
 0x100   :  { %v106_v56 = vperm.slane %v102_v53, %v2022_v14 }
 0x101   :  { %v119_v57 = vrot.slane %v112_v54, 4 }
 0x102   :  { %v186_v26 = vpop.permute.xlu0 %185 }
 0x103   :  { %v120_v58 = vsel %vm89_vm3, %v119_v57, %v106_v56 }
 0x104   :  { %v124_v59 = vperm.slane %v120_v58, %v2037_v39  ;;  %180 = vperm.xlu1 %1596, %v166_v62  }
 0x106   :  { %v128_v61 = vsel %vm89_vm3, %v124_v59, %v127_v60  ;;  %v125_v3 = vrot.slane %v124_v59, 4 }
 0x107   :  { %151 = vrot.lane.b32.xlu2 %v128_v61, %s1820_s28 }
 0x108   :  { %v126_v7 = vsel %vm89_vm3, %v125_v3, %v118_v55 }
 0x10c   :  { %170 = vperm.xlu1 %1596, %v164_v0  }
 0x10f   :  { %175 = vperm.xlu2 %1597, %v165_v2  }
 0x161   :  { %v152_v4 = vpop.permute.xlu2 %151 }
 0x162   :  { %v158_v10 = vsel %vm157_vm5, %v126_v7, %v152_v4 }
 0x169   :  { %v176_v20 = vpop.permute.xlu2 %175 }
 0x16e   :  { %v154_v5 = vpop.permute.xlu1 %153 }
 0x16f   :  { %v159_v6 = vsel %vm157_vm5, %v146_v41, %v154_v5 }
 0x170   :  { %1565 = vmatpush.msk.msra.mxu0 %vm201_vm4, %v159_v6  ;;  %1571 = vmatpush.msk.msra.mxu2 %vm201_vm4, %v159_v6 }
 0x172   :  { %220 = vmatpush.msra.mxu0 %v158_v10  ;;  %1572 = vmatpush.msra.mxu2 %v158_v10 }
 0x173   :  { %1566 = vmatmul.msk.f32.vlgmr.msra.gmra.mxu0 %vm188_vm6, %v160_v8  ;;  %1568 = vmatmul.msk.f32.vlgmr.msra.gmra.mxu2 %vm188_vm6, %v162_v9 }
 0x176   :  { %v181_v13 = vpop.permute.xlu1 %180 }
 0x17b   :  { %1567 = vmatmul.msk.f32.gmra.mxu0 %vm188_vm6, %v161_v11  ;;  %1569 = vmatmul.msk.f32.gmra.mxu2 %vm188_vm6, %v163_v12 }
 0x17e   :  { %v171_v15 = vpop.permute.xlu1 %170 }
 0x1f0   :  { %v222_v16 = vpop.f32.mrf.mxu0 }
 0x1f1   :  { %v223_v17 = vadd.f32 %v222_v16, %v171_v15 }
 0x1f3   :  { %v234_v18 = vmax.f32 %v223_v17, 0.0 }
 0x1f5   :  { %242 = vrot.lane.b32.xlu2 %v234_v18, %s1822_s19  ;;  %v254_v30 = vrot.slane %v234_v18, 4  ;;  %v259_v32 = vperm.slane %v234_v18, %v2022_v14 }
 0x1f6   :  { %v228_v19 = vpop.f32.mrf.mxu2 }
 0x1f7   :  { %v229_v21 = vadd.f32 %v228_v19, %v181_v13  ;;  %v255_v31 = vsel %vm89_vm3, 0.0, %v254_v30  ;;  %v276_v35 = vrot.slane %v259_v32, 4 }
 0x1f8   :  { %v225_v22 = vpop.f32.mrf.mxu0  ;;  %v263_v33 = vperm.slane %v255_v31, %v2022_v14 }
 0x1f9   :  { %v236_v23 = vmax.f32 %v229_v21, 0.0  ;;  %v226_v24 = vadd.f32 %v225_v22, %v176_v20 }
 0x1fa   :  { %v288_v44 = vrot.slane %v263_v33, 4 }
 0x1fb   :  { %v2080_v25 = vmax.f32 %v226_v24, 0.0  ;;  %246 = vrot.lane.b32.xlu0 %v236_v23, %s1822_s19  ;;  %v358_v56 = vrot.slane %v236_v23, 4  ;;  %v363_v58 = vperm.slane %v236_v23, %v2022_v14 }
 0x1fd   :  { %244 = vrot.lane.b32.xlu1 %v2080_v25, %s1822_s19  ;;  %v359_v57 = vsel %vm89_vm3, 0.0, %v358_v56  ;;  %v311_v59 = vperm.slane %v2080_v25, %v2022_v14  ;;  %v380_v0 = vrot.slane %v363_v58, 4  ;;  %v306_v21 = vrot.slane %v2080_v25, 4 }
 0x1fe   :  { %v231_v27 = vpop.f32.mrf.mxu2  ;;  %v367_v60 = vperm.slane %v359_v57, %v2022_v14 }
 0x1ff   :  { %v232_v28 = vadd.f32 %v231_v27, %v186_v26  ;;  %v328_v2 = vrot.slane %v311_v59, 4 }
 0x200   :  { %v392_v8 = vrot.slane %v367_v60, 4 }
 0x201   :  { %v2085_v29 = vmax.f32 %v232_v28, 0.0  ;;  %v307_v28 = vsel %vm89_vm3, 0.0, %v306_v21 }
 0x202   :  { %v315_v25 = vperm.slane %v307_v28, %v2022_v14 }
 0x203   :  { %248 = vrot.lane.b32.xlu2 %v2085_v29, %s1822_s19 }
 0x24f   :  { %v243_v34 = vpop.permute.xlu2 %242 }
 0x250   :  { %v264_v36 = vrot.slane %v243_v34, 4  ;;  %v269_v37 = vperm.slane %v243_v34, %v2022_v14 }
 0x252   :  { %v265_v38 = vsel %vm89_vm3, 0.0, %v264_v36  ;;  %v274_v40 = vrot.slane %v269_v37, 4  ;;  %v277_v41 = vsel %vm89_vm3, %v269_v37, %v276_v35  ;;  %v415_v35 = vperm.slane %v2085_v29, %v2022_v14 }
 0x253   :  { %v273_v42 = vperm.slane %v265_v38, %v2022_v14  ;;  %v285_v43 = vperm.slane %v277_v41, %v2037_v39 }
 0x254   :  { %v275_v45 = vsel %vm89_vm3, %v274_v40, %v259_v32  ;;  %v432_v41 = vrot.slane %v415_v35, 4 }
 0x255   :  { %v286_v46 = vrot.slane %v273_v42, 4  ;;  %562 = vrot.lane.b32.xlu0 %v285_v43, %s1814_s22  ;;  %v289_v47 = vsel %vm89_vm3, %v273_v42, %v288_v44  ;;  %v281_v50 = vperm.slane %v275_v45, %v2037_v39  ;;  %v300_v54 = vrot.slane %v285_v43, 4 }
 0x256   :  { %v297_v48 = vperm.slane %v289_v47, %v2037_v39  ;;  %v340_v43 = vrot.slane %v315_v25, 4 }
 0x257   :  { %v287_v49 = vsel %vm89_vm3, %v286_v46, %v263_v33  ;;  %v298_v52 = vrot.slane %v281_v50, 4  ;;  %v301_v55 = vsel %vm89_vm3, 0.0, %v300_v54  ;;  %v410_v54 = vrot.slane %v2085_v29, 4 }
 0x258   :  { %570 = vrot.lane.b32.xlu2 %v297_v48, %s1814_s22  ;;  %v2105_v51 = vperm.slane %v287_v49, %v2037_v39  ;;  %v304_v20 = vrot.slane %v297_v48, 4 }
 0x259   :  { %v299_v53 = vsel %vm89_vm3, 0.0, %v298_v52 }
 0x25a   :  { %566 = vrot.lane.b32.xlu1 %v2105_v51, %s1814_s22  ;;  %v305_v26 = vsel %vm89_vm3, 0.0, %v304_v20  ;;  %v302_v42 = vrot.slane %v2105_v51, 4 }
 0x25c   :  { %v303_v47 = vsel %vm89_vm3, 0.0, %v302_v42 }
 0x25d   :  { %558 = vrot.lane.b32.xlu0 %v281_v50, %s1814_s22  ;;  %v249_v34 = vpop.permute.xlu2 %248 }
 0x25e   :  { %v425_v40 = vperm.slane %v249_v34, %v2022_v14  ;;  %v420_v57 = vrot.slane %v249_v34, 4 }
 0x260   :  { %560 = vrot.lane.b32.xlu2 %v299_v53, %s1814_s22  ;;  %v433_v45 = vsel %vm89_vm3, %v425_v40, %v432_v41 }
 0x261   :  { %v441_v49 = vperm.slane %v433_v45, %v2037_v39 }
 0x265   :  { %564 = vrot.lane.b32.xlu0 %v301_v55, %s1814_s22 }
 0x26d   :  { %v247_v61 = vpop.permute.xlu0 %246 }
 0x26e   :  { %v368_v62 = vrot.slane %v247_v61, 4  ;;  %v373_v63 = vperm.slane %v247_v61, %v2022_v14 }
 0x26f   :  { %v245_v1 = vpop.permute.xlu1 %244 }
 0x270   :  { %v369_v3 = vsel %vm89_vm3, 0.0, %v368_v62  ;;  %v378_v4 = vrot.slane %v373_v63, 4  ;;  %v321_v5 = vperm.slane %v245_v1, %v2022_v14  ;;  %v381_v7 = vsel %vm89_vm3, %v373_v63, %v380_v0 }
 0x271   :  { %v377_v6 = vperm.slane %v369_v3, %v2022_v14  ;;  %v316_v9 = vrot.slane %v245_v1, 4  ;;  %v389_v10 = vperm.slane %v381_v7, %v2037_v39  ;;  %v421_v62 = vsel %vm89_vm3, 0.0, %v420_v57 }
 0x272   :  { %v329_v11 = vsel %vm89_vm3, %v321_v5, %v328_v2  ;;  %v326_v15 = vrot.slane %v321_v5, 4  ;;  %v379_v17 = vsel %vm89_vm3, %v378_v4, %v363_v58  ;;  %v430_v58 = vrot.slane %v425_v40, 4 }
 0x273   :  { %v337_v12 = vperm.slane %v329_v11, %v2037_v39  ;;  %v393_v13 = vsel %vm89_vm3, %v377_v6, %v392_v8  ;;  %594 = vrot.lane.b32.xlu1 %v389_v10, %s1814_s22  ;;  %v385_v18 = vperm.slane %v379_v17, %v2037_v39  ;;  %v317_v19 = vsel %vm89_vm3, 0.0, %v316_v9 }
 0x274   :  { %v401_v16 = vperm.slane %v393_v13, %v2037_v39  ;;  %v327_v22 = vsel %vm89_vm3, %v326_v15, %v311_v59  ;;  %v325_v23 = vperm.slane %v317_v19, %v2022_v14  ;;  %v390_v36 = vrot.slane %v377_v6, 4 }
 0x275   :  { %578 = vrot.lane.b32.xlu2 %v337_v12, %s1814_s22  ;;  %v402_v24 = vrot.slane %v385_v18, 4  ;;  %v333_v27 = vperm.slane %v327_v22, %v2037_v39  ;;  %v352_v32 = vrot.slane %v337_v12, 4  ;;  %v404_v51 = vrot.slane %v389_v10, 4 }
 0x276   :  { %602 = vrot.lane.b32.xlu0 %v401_v16, %s1814_s22  ;;  %v338_v30 = vrot.slane %v325_v23, 4  ;;  %v391_v44 = vsel %vm89_vm3, %v390_v36, %v367_v60  ;;  %v341_v46 = vsel %vm89_vm3, %v325_v23, %v340_v43  ;;  %v408_v52 = vrot.slane %v401_v16, 4 }
 0x277   :  { %v403_v31 = vsel %vm89_vm3, 0.0, %v402_v24  ;;  %v353_v37 = vsel %vm89_vm3, 0.0, %v352_v32  ;;  %v397_v48 = vperm.slane %v391_v44, %v2037_v39  ;;  %v349_v50 = vperm.slane %v341_v46, %v2037_v39 }
 0x278   :  { %v339_v33 = vsel %vm89_vm3, %v338_v30, %v315_v25  ;;  %v405_v55 = vsel %vm89_vm3, 0.0, %v404_v51  ;;  %v409_v56 = vsel %vm89_vm3, 0.0, %v408_v52  ;;  %v411_v60 = vsel %vm89_vm3, 0.0, %v410_v54 }
 0x279   :  { %v345_v38 = vperm.slane %v339_v33, %v2037_v39  ;;  %v356_v53 = vrot.slane %v349_v50, 4  ;;  %v406_v61 = vrot.slane %v397_v48, 4  ;;  %v431_v29 = vsel %vm89_vm3, %v430_v58, %v415_v35 }
 0x27a   :  { %v419_v63 = vperm.slane %v411_v60, %v2022_v14  ;;  %v429_v0 = vperm.slane %v421_v62, %v2022_v14  ;;  %v437_v2 = vperm.slane %v431_v29, %v2037_v39  ;;  %v350_v4 = vrot.slane %v333_v27, 4 }
 0x27b   :  { %572 = vrot.lane.b32.xlu1 %v305_v26, %s1814_s22  ;;  %v357_v59 = vsel %vm89_vm3, 0.0, %v356_v53  ;;  %v407_v1 = vsel %vm89_vm3, 0.0, %v406_v61  ;;  %v354_v6 = vrot.slane %v345_v38, 4  ;;  %v456_v13 = vrot.slane %v441_v49, 4 }
 0x27c   :  { %v444_v3 = vrot.slane %v419_v63, 4  ;;  %v442_v7 = vrot.slane %v429_v0, 4  ;;  %v351_v8 = vsel %vm89_vm3, 0.0, %v350_v4  ;;  %v454_v12 = vrot.slane %v437_v2, 4 }
 0x27d   :  { %574 = vrot.lane.b32.xlu2 %v333_v27, %s1814_s22  ;;  %v355_v10 = vsel %vm89_vm3, 0.0, %v354_v6  ;;  %v457_v17 = vsel %vm89_vm3, 0.0, %v456_v13 }
 0x27e   :  { %592 = vrot.lane.b32.xlu0 %v403_v31, %s1814_s22  ;;  %v445_v5 = vsel %vm89_vm3, %v429_v0, %v444_v3  ;;  %v443_v11 = vsel %vm89_vm3, %v442_v7, %v419_v63  ;;  %v455_v16 = vsel %vm89_vm3, 0.0, %v454_v12 }
 0x27f   :  { %v453_v9 = vperm.slane %v445_v5, %v2037_v39  ;;  %v449_v15 = vperm.slane %v443_v11, %v2037_v39 }
 0x281   :  { %v458_v21 = vrot.slane %v449_v15, 4 }
 0x283   :  { %590 = vrot.lane.b32.xlu1 %v385_v18, %s1814_s22  ;;  %v460_v18 = vrot.slane %v453_v9, 4  ;;  %v459_v23 = vsel %vm89_vm3, 0.0, %v458_v21 }
 0x285   :  { %580 = vrot.lane.b32.xlu2 %v353_v37, %s1814_s22  ;;  %v461_v20 = vsel %vm89_vm3, 0.0, %v460_v18 }
 0x286   :  { %582 = vrot.lane.b32.xlu0 %v345_v38, %s1814_s22 }
 0x28b   :  { %568 = vrot.lane.b32.xlu1 %v303_v47, %s1814_s22 }
 0x28d   :  { %598 = vrot.lane.b32.xlu2 %v397_v48, %s1814_s22 }
 0x28e   :  { %610 = vrot.lane.b32.xlu0 %v441_v49, %s1814_s22 }
 0x293   :  { %596 = vrot.lane.b32.xlu1 %v405_v55, %s1814_s22 }
 0x295   :  { %604 = vrot.lane.b32.xlu2 %v409_v56, %s1814_s22 }
 0x296   :  { %588 = vrot.lane.b32.xlu0 %v357_v59, %s1814_s22 }
 0x29b   :  { %586 = vrot.lane.b32.xlu1 %v349_v50, %s1814_s22 }
 0x29d   :  { %600 = vrot.lane.b32.xlu2 %v407_v1, %s1814_s22 }
 0x29e   :  { %606 = vrot.lane.b32.xlu0 %v437_v2, %s1814_s22 }
 0x2a3   :  { %576 = vrot.lane.b32.xlu1 %v351_v8, %s1814_s22 }
 0x2a5   :  { %618 = vrot.lane.b32.xlu2 %v453_v9, %s1814_s22 }
 0x2a6   :  { %584 = vrot.lane.b32.xlu0 %v355_v10, %s1814_s22 }
 0x2ab   :  { %614 = vrot.lane.b32.xlu1 %v449_v15, %s1814_s22 }
 0x2ad   :  { %608 = vrot.lane.b32.xlu2 %v455_v16, %s1814_s22 }
 0x2ae   :  { %612 = vrot.lane.b32.xlu0 %v457_v17, %s1814_s22 }
 0x2b2   :  { %v571_v19 = vpop.permute.xlu2 %570 }
 0x2b3   :  { %660 = vst.msk [vmem:[#allocation3 + $0xc] sm:$0x3] %vm51_vm2, %v571_v19  ;;  %620 = vrot.lane.b32.xlu1 %v461_v20, %s1814_s22 }
 0x2ba   :  { %v561_v22 = vpop.permute.xlu2 %560  ;;  %v692_v15 = vld [vmem:[#allocation3 + $0xc] sm:$0x3] }
 0x2bb   :  { %655 = vst.msk [vmem:[#allocation3 + $0x2] sm:$0x3] %vm51_vm2, %v561_v22  ;;  %616 = vrot.lane.b32.xlu1 %v459_v23, %s1814_s22  ;;  %v954_v20 = vrot.slane %v692_v15, 4 }
 0x2c2   :  { %v687_v30 = vld [vmem:[#allocation3 + $0x2] sm:$0x3] }
 0x2c7   :  { %v563_v24 = vpop.permute.xlu0 %562 }
 0x2c8   :  { %656 = vst.msk [vmem:[#allocation3 + $0x4] sm:$0x3] %vm51_vm2, %v563_v24 }
 0x2cc   :  { %v567_v26 = vpop.permute.xlu1 %566 }
 0x2cd   :  { %658 = vst.msk [vmem:[#allocation3 + $0x8] sm:$0x3] %vm51_vm2, %v567_v26 }
 0x2cf   :  { %v559_v27 = vpop.permute.xlu0 %558  ;;  %v579_v28 = vpop.permute.xlu2 %578  ;;  %v688_v31 = vld [vmem:[#allocation3 + $0x4] sm:$0x3] }
 0x2d0   :  { %654 = vst.msk [vmem:[#allocation3] sm:$0x3] %vm51_vm2, %v559_v27  ;;  %v2206_v25 = vpack.i.bf16 %v688_v31, %v687_v30  ;;  %v942_v32 = vrot.slane %v688_v31, 4 }
 0x2d1   :  { %664 = vst.msk [vmem:[#allocation3 + $0x14] sm:$0x3] %vm51_vm2, %v579_v28 }
 0x2d2   :  { %1599 = vrot.lane.b32.xlu1 %v2206_v25, %s1816_s0 }
 0x2d4   :  { %v2260_v18 = vld [vmem:[#allocation3 + $0x8] sm:$0x3] }
 0x2d5   :  { %v955_v28 = vsel %vm89_vm3, %v954_v20, %v2260_v18 }
 0x2d7   :  { %v565_v33 = vpop.permute.xlu0 %564  ;;  %v575_v34 = vpop.permute.xlu2 %574  ;;  %v2211_v35 = vld [vmem:[#allocation3] sm:$0x3] }
 0x2d8   :  { %657 = vst.msk [vmem:[#allocation3 + $0x6] sm:$0x3] %vm51_vm2, %v565_v33  ;;  %v943_v36 = vsel %vm89_vm3, %v942_v32, %v2211_v35  ;;  %v2217_v37 = vld [vmem:[#allocation3 + $0x14] sm:$0x3] }
 0x2d9   :  { %662 = vst.msk [vmem:[#allocation3 + $0x10] sm:$0x3] %vm51_vm2, %v575_v34  ;;  %v982_v40 = vrot.slane %v2217_v37, 4  ;;  %v947_v47 = vperm.slane %v943_v36, %v2022_v14  ;;  %v959_v34 = vperm.slane %v955_v28, %v2022_v14 }
 0x2df   :  { %v581_v38 = vpop.permute.xlu2 %580  ;;  %v2220_v41 = vld [vmem:[#allocation3 + $0x6] sm:$0x3] }
 0x2e0   :  { %665 = vst.msk [vmem:[#allocation3 + $0x16] sm:$0x3] %vm51_vm2, %v581_v38  ;;  %v694_v42 = vld [vmem:[#allocation3 + $0x10] sm:$0x3]  ;;  %v948_v43 = vrot.slane %v2220_v41, 4 }
 0x2e1   :  { %v2225_v44 = vsel %vm89_vm3, %v982_v40, %v694_v42 }
 0x2e2   :  { %v949_v45 = vsel %vm89_vm3, %v948_v43, %v687_v30 }
 0x2e3   :  { %v953_v46 = vperm.slane %v949_v45, %v2022_v14 }
 0x2e5   :  { %v966_v48 = vrot.slane %v953_v46, 4  ;;  %v595_v49 = vpop.permute.xlu1 %594 }
 0x2e6   :  { %672 = vst.msk [vmem:[#allocation3 + $0x24] sm:$0x3] %vm51_vm2, %v595_v49 }
 0x2e7   :  { %v599_v50 = vpop.permute.xlu2 %598  ;;  %v967_v51 = vsel %vm89_vm3, %v966_v48, %v947_v47 }
 0x2e8   :  { %674 = vst.msk [vmem:[#allocation3 + $0x28] sm:$0x3] %vm51_vm2, %v599_v50  ;;  %v603_v52 = vpop.permute.xlu0 %602  ;;  %v971_v32 = vperm.slane %v967_v51, %v2037_v39 }
 0x2e9   :  { %676 = vst.msk [vmem:[#allocation3 + $0x2c] sm:$0x3] %vm51_vm2, %v603_v52 }
 0x2ea   :  { %v980_v40 = vrot.slane %v971_v32, 4 }
 0x2ed   :  { %v573_v53 = vpop.permute.xlu1 %572  ;;  %v704_v1 = vld [vmem:[#allocation3 + $0x24] sm:$0x3] }
 0x2ee   :  { %661 = vst.msk [vmem:[#allocation3 + $0xe] sm:$0x3] %vm51_vm2, %v573_v53  ;;  %v1022_v4 = vrot.slane %v704_v1, 4 }
 0x2ef   :  { %v605_v54 = vpop.permute.xlu2 %604  ;;  %v706_v58 = vld [vmem:[#allocation3 + $0x28] sm:$0x3] }
 0x2f0   :  { %677 = vst.msk [vmem:[#allocation3 + $0x2e] sm:$0x3] %vm51_vm2, %v605_v54  ;;  %v593_v55 = vpop.permute.xlu0 %592  ;;  %v2236_v56 = vld [vmem:[#allocation3 + $0x2c] sm:$0x3]  ;;  %v2282_v45 = vpack.i.bf16 %v2211_v35, %v706_v58 }
 0x2f1   :  { %671 = vst.msk [vmem:[#allocation3 + $0x22] sm:$0x3] %vm51_vm2, %v593_v55  ;;  %v1034_v57 = vrot.slane %v2236_v56, 4 }
 0x2f3   :  { %v1035_v59 = vsel %vm89_vm3, %v1034_v57, %v706_v58 }
 0x2f4   :  { %v1039_v17 = vperm.slane %v1035_v59, %v2022_v14 }
 0x2f5   :  { %v591_v60 = vpop.permute.xlu1 %590  ;;  %v693_v61 = vld [vmem:[#allocation3 + $0xe] sm:$0x3] }
 0x2f6   :  { %670 = vst.msk [vmem:[#allocation3 + $0x20] sm:$0x3] %vm51_vm2, %v591_v60  ;;  %v2242_v29 = vpack.i.bf16 %v694_v42, %v693_v61  ;;  %v960_v19 = vrot.slane %v693_v61, 4 }
 0x2f7   :  { %v601_v62 = vpop.permute.xlu2 %600  ;;  %v2249_v3 = vld [vmem:[#allocation3 + $0x2e] sm:$0x3] }
 0x2f8   :  { %675 = vst.msk [vmem:[#allocation3 + $0x2a] sm:$0x3] %vm51_vm2, %v601_v62  ;;  %v583_v63 = vpop.permute.xlu0 %582  ;;  %v703_v0 = vld [vmem:[#allocation3 + $0x22] sm:$0x3]  ;;  %1609 = vrot.lane.b32.xlu2 %v2242_v29, %s1816_s0  ;;  %v1040_v7 = vrot.slane %v2249_v3, 4 }
 0x2f9   :  { %666 = vst.msk [vmem:[#allocation3 + $0x18] sm:$0x3] %vm51_vm2, %v583_v63  ;;  %v1623_v2 = vpack.i.bf16 %v704_v1, %v703_v0 }
 0x2fb   :  { %1624 = vrot.lane.b32.xlu0 %v1623_v2, %s1818_s27 }
 0x2fd   :  { %v569_v5 = vpop.permute.xlu1 %568  ;;  %v702_v6 = vld [vmem:[#allocation3 + $0x20] sm:$0x3] }
 0x2fe   :  { %659 = vst.msk [vmem:[#allocation3 + $0xa] sm:$0x3] %vm51_vm2, %v569_v5  ;;  %v1023_v10 = vsel %vm89_vm3, %v1022_v4, %v702_v6 }
 0x2ff   :  { %v619_v8 = vpop.permute.xlu2 %618  ;;  %v707_v9 = vld [vmem:[#allocation3 + $0x2a] sm:$0x3]  ;;  %v1027_v35 = vperm.slane %v1023_v10, %v2022_v14 }
 0x300   :  { %684 = vst.msk [vmem:[#allocation3 + $0x3c] sm:$0x3] %vm51_vm2, %v619_v8  ;;  %v611_v11 = vpop.permute.xlu0 %610  ;;  %v1041_v12 = vsel %vm89_vm3, %v1040_v7, %v707_v9  ;;  %1614 = vrot.lane.b32.xlu2 %v1623_v2, %s1816_s0  ;;  %v2304_v60 = vpack.i.bf16 %v707_v9, %v702_v6  ;;  %v698_v1 = vld [vmem:[#allocation3 + $0x18] sm:$0x3]  ;;  %v697_v6 = vld [vmem:[#allocation3 + $0x16] sm:$0x3] }
 0x301   :  { %680 = vst.msk [vmem:[#allocation3 + $0x34] sm:$0x3] %vm51_vm2, %v611_v11  ;;  %v1045_v13 = vperm.slane %v1041_v12, %v2022_v14  ;;  %v988_v12 = vrot.slane %v697_v6, 4 }
 0x303   :  { %v1052_v16 = vrot.slane %v1045_v13, 4 }
 0x305   :  { %v1053_v21 = vsel %vm89_vm3, %v1052_v16, %v1039_v17  ;;  %v597_v22 = vpop.permute.xlu1 %596  ;;  %v691_v23 = vld [vmem:[#allocation3 + $0xa] sm:$0x3] }
 0x306   :  { %673 = vst.msk [vmem:[#allocation3 + $0x26] sm:$0x3] %vm51_vm2, %v597_v22  ;;  %v2264_v26 = vpack.i.bf16 %v692_v15, %v691_v23  ;;  %v961_v27 = vsel %vm89_vm3, %v960_v19, %v691_v23  ;;  %v1057_v54 = vperm.slane %v1053_v21, %v2037_v39 }
 0x307   :  { %v609_v24 = vpop.permute.xlu2 %608  ;;  %v965_v31 = vperm.slane %v961_v27, %v2022_v14  ;;  %v987_v27 = vperm.slane %v2225_v44, %v2022_v14  ;;  %v716_v28 = vld [vmem:[#allocation3 + $0x3c] sm:$0x3] }
 0x308   :  { %679 = vst.msk [vmem:[#allocation3 + $0x32] sm:$0x3] %vm51_vm2, %v609_v24  ;;  %v589_v30 = vpop.permute.xlu0 %588  ;;  %1604 = vrot.lane.b32.xlu1 %v2264_v26, %s1816_s0  ;;  %v2298_v55 = vld [vmem:[#allocation3 + $0x34] sm:$0x3]  ;;  %v1058_v4 = vrot.slane %v1057_v54, 4 }
 0x309   :  { %669 = vst.msk [vmem:[#allocation3 + $0x1e] sm:$0x3] %vm51_vm2, %v589_v30  ;;  %v972_v33 = vrot.slane %v965_v31, 4  ;;  %v1062_v2 = vrot.slane %v2298_v55, 4 }
 0x30b   :  { %v973_v36 = vsel %vm89_vm3, %v972_v33, %v959_v34  ;;  %v1074_v33 = vrot.slane %v716_v28, 4 }
 0x30c   :  { %v977_v38 = vperm.slane %v973_v36, %v2037_v39 }
 0x30d   :  { %v587_v42 = vpop.permute.xlu1 %586  ;;  %v2278_v43 = vld [vmem:[#allocation3 + $0x26] sm:$0x3] }
 0x30e   :  { %668 = vst.msk [vmem:[#allocation3 + $0x1c] sm:$0x3] %vm51_vm2, %v587_v42  ;;  %v1028_v46 = vrot.slane %v2278_v43, 4  ;;  %v2286_v47 = vsel %vm89_vm3, %v977_v38, %v980_v40  ;;  %v978_v48 = vrot.slane %v977_v38, 4 }
 0x310   :  { %v607_v49 = vpop.permute.xlu0 %606  ;;  %1619 = vrot.lane.b32.xlu1 %v2282_v45, %s1816_s0  ;;  %v1029_v50 = vsel %vm89_vm3, %v1028_v46, %v703_v0  ;;  %v2294_v52 = vsel %vm89_vm3, %v978_v48, %v971_v32  ;;  %v701_v10 = vld [vmem:[#allocation3 + $0x1e] sm:$0x3]  ;;  %v1633_v48 = vpack.i.bf16 %v2260_v18, %v698_v1 }
 0x311   :  { %678 = vst.msk [vmem:[#allocation3 + $0x30] sm:$0x3] %vm51_vm2, %v607_v49  ;;  %v1033_v51 = vperm.slane %v1029_v50, %v2022_v14  ;;  %v1000_v15 = vrot.slane %v701_v10, 4  ;;  %v1653_v17 = vpack.i.bf16 %v701_v10, %v2217_v37 }
 0x313   :  { %v1046_v53 = vrot.slane %v1033_v51, 4 }
 0x315   :  { %v577_v57 = vpop.permute.xlu1 %576  ;;  %v2300_v58 = vld [vmem:[#allocation3 + $0x1c] sm:$0x3]  ;;  %v1047_v59 = vsel %vm89_vm3, %v1046_v53, %v1027_v35  ;;  %v711_v53 = vld [vmem:[#allocation3 + $0x32] sm:$0x3] }
 0x316   :  { %663 = vst.msk [vmem:[#allocation3 + $0x12] sm:$0x3] %vm51_vm2, %v577_v57  ;;  %v994_v61 = vrot.slane %v2300_v58, 4  ;;  %v1051_v62 = vperm.slane %v1047_v59, %v2037_v39 }
 0x318   :  { %v585_v63 = vpop.permute.xlu0 %584  ;;  %v710_v0 = vld [vmem:[#allocation3 + $0x30] sm:$0x3]  ;;  %1649 = vrot.lane.b32.xlu1 %v2304_v60, %s1816_s0  ;;  %v995_v5 = vsel %vm89_vm3, %v994_v61, %v698_v1  ;;  %v1060_v7 = vrot.slane %v1051_v62, 4  ;;  %v2315_v9 = vsel %vm89_vm3, %v1058_v4, %v1051_v62 }
 0x319   :  { %667 = vst.msk [vmem:[#allocation3 + $0x1a] sm:$0x3] %vm51_vm2, %v585_v63  ;;  %v1063_v8 = vsel %vm89_vm3, %v1062_v2, %v710_v0  ;;  %v999_v31 = vperm.slane %v995_v5, %v2022_v14  ;;  %v1673_v44 = vpack.i.bf16 %v710_v0, %v2249_v3 }
 0x31a   :  { %v2318_v11 = vsel %vm89_vm3, %v1057_v54, %v1060_v7  ;;  %v1067_v63 = vperm.slane %v1063_v8, %v2022_v14 }
 0x31d   :  { %v615_v13 = vpop.permute.xlu1 %614  ;;  %v695_v16 = vld [vmem:[#allocation3 + $0x12] sm:$0x3] }
 0x31e   :  { %682 = vst.msk [vmem:[#allocation3 + $0x38] sm:$0x3] %vm51_vm2, %v615_v13  ;;  %v1638_v19 = vpack.i.bf16 %v695_v16, %v2220_v41  ;;  %v989_v20 = vsel %vm89_vm3, %v988_v12, %v695_v16 }
 0x31f   :  { %v993_v22 = vperm.slane %v989_v20, %v2022_v14 }
 0x320   :  { %v613_v21 = vpop.permute.xlu0 %612  ;;  %v699_v23 = vld [vmem:[#allocation3 + $0x1a] sm:$0x3]  ;;  %1654 = vrot.lane.b32.xlu1 %v1653_v17, %s1818_s27  ;;  %1639 = vrot.lane.b32.xlu0 %v1638_v19, %s1818_s27 }
 0x321   :  { %681 = vst.msk [vmem:[#allocation3 + $0x36] sm:$0x3] %vm51_vm2, %v613_v21  ;;  %v1001_v24 = vsel %vm89_vm3, %v1000_v15, %v699_v23  ;;  %1629 = vrot.lane.b32.xlu2 %v1638_v19, %s1816_s0  ;;  %v1006_v37 = vrot.slane %v993_v22, 4  ;;  %v1668_v7 = vpack.i.bf16 %v2300_v58, %v699_v23  ;;  %v1688_v23 = vpack.i.bf16 %v2298_v55, %v711_v53 }
 0x322   :  { %v1005_v41 = vperm.slane %v1001_v24, %v2022_v14 }
 0x323   :  { %v1007_v32 = vsel %vm89_vm3, %v1006_v37, %v987_v27 }
 0x324   :  { %v1012_v30 = vrot.slane %v1005_v41, 4  ;;  %v1011_v34 = vperm.slane %v1007_v32, %v2037_v39 }
 0x325   :  { %v621_v36 = vpop.permute.xlu1 %620  ;;  %v714_v38 = vld [vmem:[#allocation3 + $0x38] sm:$0x3] }
 0x326   :  { %v1013_v40 = vsel %vm89_vm3, %v1012_v30, %v999_v31  ;;  %685 = vst.msk [vmem:[#allocation3 + $0x3e] sm:$0x3] %vm51_vm2, %v621_v36  ;;  %v1075_v42 = vsel %vm89_vm3, %v1074_v33, %v714_v38  ;;  %v1020_v50 = vrot.slane %v1011_v34, 4  ;;  %v1693_v20 = vpack.i.bf16 %v714_v38, %v2236_v56 }
 0x327   :  { %v1017_v46 = vperm.slane %v1013_v40, %v2037_v39  ;;  %v1079_v15 = vperm.slane %v1075_v42, %v2022_v14 }
 0x328   :  { %v713_v49 = vld [vmem:[#allocation3 + $0x36] sm:$0x3]  ;;  %1674 = vrot.lane.b32.xlu1 %v1673_v44, %s1818_s27  ;;  %1644 = vrot.lane.b32.xlu0 %v1653_v17, %s1816_s0 }
 0x329   :  { %v1068_v51 = vrot.slane %v713_v49, 4  ;;  %v1018_v35 = vrot.slane %v1017_v46, 4  ;;  %1634 = vrot.lane.b32.xlu2 %v1633_v48, %s1816_s0  ;;  %v2346_v54 = vsel %vm89_vm3, %v1017_v46, %v1020_v50  ;;  %v1678_v12 = vpack.i.bf16 %v2278_v43, %v713_v49 }
 0x32a   :  { %v1783_v57 = vpack.i.bf16 %v2286_v47, %v2346_v54 }
 0x32b   :  { %v1069_v3 = vsel %vm89_vm3, %v1068_v51, %v711_v53  ;;  %v2352_v18 = vsel %vm89_vm3, %v1018_v35, %v1011_v34 }
 0x32c   :  { %v1073_v59 = vperm.slane %v1069_v3, %v2022_v14 }
 0x32d   :  { %v617_v61 = vpop.permute.xlu1 %616  ;;  %v717_v62 = vld [vmem:[#allocation3 + $0x3e] sm:$0x3] }
 0x32e   :  { %v1086_v0 = vrot.slane %v1073_v59, 4  ;;  %683 = vst.msk [vmem:[#allocation3 + $0x3a] sm:$0x3] %vm51_vm2, %v617_v61  ;;  %v1708_v1 = vpack.i.bf16 %v697_v6, %v717_v62  ;;  %v1080_v4 = vrot.slane %v717_v62, 4 }
 0x330   :  { %v1087_v2 = vsel %vm89_vm3, %v1086_v0, %v1067_v63  ;;  %1664 = vrot.lane.b32.xlu0 %v1673_v44, %s1816_s0  ;;  %1709 = vrot.lane.b32.xlu1 %v1708_v1, %s1816_s0 }
 0x331   :  { %1659 = vrot.lane.b32.xlu2 %v2304_v60, %s1818_s27  ;;  %v1091_v13 = vperm.slane %v1087_v2, %v2037_v39 }
 0x333   :  { %v1100_v17 = vrot.slane %v1091_v13, 4 }
 0x335   :  { %v715_v5 = vld [vmem:[#allocation3 + $0x3a] sm:$0x3] }
 0x336   :  { %v1718_v10 = vpack.i.bf16 %v716_v28, %v715_v5  ;;  %v1081_v8 = vsel %vm89_vm3, %v1080_v4, %v715_v5 }
 0x337   :  { %v1085_v6 = vperm.slane %v1081_v8, %v2022_v14 }
 0x338   :  { %1669 = vrot.lane.b32.xlu0 %v1668_v7, %s1816_s0  ;;  %1719 = vrot.lane.b32.xlu1 %v1718_v10, %s1816_s0 }
 0x339   :  { %1679 = vrot.lane.b32.xlu2 %v1678_v12, %s1816_s0  ;;  %v1092_v60 = vrot.slane %v1085_v6, 4 }
 0x33b   :  { %v1093_v58 = vsel %vm89_vm3, %v1092_v60, %v1079_v15 }
 0x33c   :  { %v1097_v16 = vperm.slane %v1093_v58, %v2037_v39 }
 0x33e   :  { %v2374_v43 = vsel %vm89_vm3, %v1097_v16, %v1100_v17  ;;  %v1098_v19 = vrot.slane %v1097_v16, 4 }
 0x33f   :  { %v1778_v21 = vpack.i.bf16 %v2318_v11, %v2374_v43 }
 0x340   :  { %1684 = vrot.lane.b32.xlu0 %v1678_v12, %s1818_s27  ;;  %1724 = vrot.lane.b32.xlu1 %v2206_v25, %s1818_s27  ;;  %v2383_v22 = vsel %vm89_vm3, %v1098_v19, %v1091_v13 }
 0x341   :  { %1694 = vrot.lane.b32.xlu2 %v1693_v20, %s1816_s0 }
 0x344   :  { %v1600_v56 = vpop.permute.xlu1 %1599 }
 0x345   :  { %v1601_v41 = vunpack.i.l.bf16 %v1600_v56  ;;  %v1602_v31 = vunpack.i.h.bf16 %v1600_v56 }
 0x347   :  { %v1262_v36 = vrot.slane %v1602_v31, 4 }
 0x348   :  { %1689 = vrot.lane.b32.xlu0 %v1688_v23, %s1816_s0  ;;  %1739 = vrot.lane.b32.xlu1 %v2282_v45, %s1818_s27 }
 0x349   :  { %1699 = vrot.lane.b32.xlu2 %v1688_v23, %s1818_s27 }
 0x350   :  { %1704 = vrot.lane.b32.xlu0 %v1693_v20, %s1818_s27 }
 0x351   :  { %1729 = vrot.lane.b32.xlu2 %v2242_v29, %s1818_s27 }
 0x352   :  { %v2400_v25 = vpop.permute.xlu2 %1609 }
 0x353   :  { %v1611_v55 = vunpack.i.l.bf16 %v2400_v25 }
 0x355   :  { %v1280_v28 = vrot.slane %v1611_v55, 4  ;;  %v1612_v55 = vunpack.i.h.bf16 %v2400_v25 }
 0x358   :  { %1714 = vrot.lane.b32.xlu0 %v1708_v1, %s1818_s27 }
 0x359   :  { %1744 = vrot.lane.b32.xlu2 %v1718_v10, %s1818_s27 }
 0x35a   :  { %v2402_v45 = vpop.permute.xlu2 %1614 }
 0x360   :  { %1734 = vrot.lane.b32.xlu0 %v1668_v7, %s1818_s27 }
 0x361   :  { %1749 = vrot.lane.b32.xlu2 %v2264_v26, %s1818_s27 }
 0x368   :  { %1754 = vrot.lane.b32.xlu0 %v1633_v48, %s1818_s27 }
 0x36d   :  { %v2421_v62 = vpop.permute.xlu0 %1624 }
 0x37a   :  { %v1605_v24 = vpop.permute.xlu1 %1604 }
 0x37b   :  { %v1630_v29 = vpop.permute.xlu2 %1629  ;;  %v1606_v37 = vunpack.i.l.bf16 %v1605_v24  ;;  %v1607_v26 = vunpack.i.h.bf16 %v1605_v24  ;;  %v1616_v24 = vunpack.i.l.bf16 %v2402_v45 }
 0x37c   :  { %v1631_v27 = vunpack.i.l.bf16 %v1630_v29 }
 0x37d   :  { %v1281_v33 = vsel %vm89_vm3, %v1280_v28, %v1606_v37  ;;  %v1274_v46 = vrot.slane %v1607_v26, 4 }
 0x37e   :  { %v1268_v30 = vrot.slane %v1631_v27, 4  ;;  %v1285_v40 = vperm.slane %v1281_v33, %v2022_v14  ;;  %v1632_v27 = vunpack.i.h.bf16 %v1630_v29 }
 0x380   :  { %v1269_v32 = vsel %vm89_vm3, %v1268_v30, %v1601_v41  ;;  %v1292_v53 = vrot.slane %v1285_v40, 4 }
 0x381   :  { %v1273_v38 = vperm.slane %v1269_v32, %v2022_v14 }
 0x382   :  { %v2407_v34 = vpop.permute.xlu1 %1619 }
 0x383   :  { %v2411_v44 = vpop.permute.xlu2 %1634  ;;  %v1622_v42 = vunpack.i.h.bf16 %v2407_v34  ;;  %v1286_v35 = vrot.slane %v1273_v38, 4  ;;  %v1617_v38 = vunpack.i.h.bf16 %v2402_v45  ;;  %v1621_v29 = vunpack.i.l.bf16 %v2407_v34 }
 0x384   :  { %v1637_v48 = vunpack.i.h.bf16 %v2411_v44 }
 0x385   :  { %v1263_v49 = vsel %vm89_vm3, %v1262_v36, %v1622_v42 }
 0x386   :  { %v1275_v50 = vsel %vm89_vm3, %v1274_v46, %v1637_v48  ;;  %v1267_v51 = vperm.slane %v1263_v49, %v2022_v14 }
 0x387   :  { %v1279_v3 = vperm.slane %v1275_v50, %v2022_v14 }
 0x388   :  { %v1287_v59 = vsel %vm89_vm3, %v1286_v35, %v1267_v51 }
 0x389   :  { %v1293_v61 = vsel %vm89_vm3, %v1292_v53, %v1279_v3  ;;  %v2429_v2 = vperm.slane %v1287_v59, %v2037_v39 }
 0x38a   :  { %v1650_v63 = vpop.permute.xlu1 %1649  ;;  %v2424_v0 = vperm.slane %v1293_v61, %v2037_v39  ;;  %v1342_v61 = vrot.slane %v1617_v38, 4 }
 0x38b   :  { %v2426_v1 = vpop.permute.xlu2 %1659  ;;  %v1652_v37 = vunpack.i.h.bf16 %v1650_v63  ;;  %v1651_v42 = vunpack.i.l.bf16 %v1650_v63 }
 0x38c   :  { %v1298_v4 = vrot.slane %v2424_v0, 4 }
 0x38e   :  { %v2434_v5 = vsel %vm89_vm3, %v1298_v4, %v2429_v2  ;;  %v1636_v4 = vunpack.i.l.bf16 %v2411_v44 }
 0x392   :  { %v2436_v7 = vpop.permute.xlu0 %1639  ;;  %v2438_v10 = vpop.permute.xlu1 %1654 }
 0x393   :  { %v2440_v8 = vpop.permute.xlu2 %1679 }
 0x394   :  { %v1682_v13 = vunpack.i.h.bf16 %v2440_v8 }
 0x396   :  { %v1348_v58 = vrot.slane %v1682_v13, 4 }
 0x398   :  { %v1349_v30 = vsel %vm89_vm3, %v1348_v58, %v1616_v24 }
 0x399   :  { %v1353_v46 = vperm.slane %v1349_v30, %v2022_v14 }
 0x39a   :  { %v1645_v12 = vpop.permute.xlu0 %1644  ;;  %v2442_v6 = vpop.permute.xlu1 %1674 }
 0x39b   :  { %v1646_v60 = vunpack.i.l.bf16 %v1645_v12  ;;  %v2445_v15 = vpop.permute.xlu2 %1694  ;;  %v1647_v31 = vunpack.i.h.bf16 %v1645_v12 }
 0x39c   :  { %v1696_v20 = vunpack.i.l.bf16 %v2445_v15 }
 0x39d   :  { %v1302_v19 = vrot.slane %v1646_v60, 4  ;;  %v1320_v48 = vrot.slane %v1647_v31, 4 }
 0x39e   :  { %v1354_v26 = vrot.slane %v1696_v20, 4 }
 0x39f   :  { %v1303_v32 = vsel %vm89_vm3, %v1302_v19, %v1612_v55 }
 0x3a0   :  { %v1307_v49 = vperm.slane %v1303_v32, %v2022_v14  ;;  %v1355_v53 = vsel %vm89_vm3, %v1354_v26, %v1621_v29  ;;  %v1300_v26 = vrot.slane %v2429_v2, 4 }
 0x3a1   :  { %v1359_v19 = vperm.slane %v1355_v53, %v2022_v14 }
 0x3a2   :  { %v2447_v16 = vpop.permute.xlu0 %1664  ;;  %v1710_v17 = vpop.permute.xlu1 %1709  ;;  %v1301_v2 = vsel %vm89_vm3, %v2424_v0, %v1300_v26 }
 0x3a3   :  { %v1666_v23 = vunpack.i.l.bf16 %v2447_v16  ;;  %v1712_v56 = vunpack.i.h.bf16 %v1710_v17  ;;  %v1711_v3 = vunpack.i.l.bf16 %v1710_v17  ;;  %v1366_v17 = vrot.slane %v1353_v46, 4 }
 0x3a5   :  { %v1360_v41 = vrot.slane %v1666_v23, 4  ;;  %v1308_v28 = vrot.slane %v1712_v56, 4  ;;  %v1343_v23 = vsel %vm89_vm3, %v1342_v61, %v1651_v42  ;;  %v1400_v56 = vrot.slane %v1711_v3, 4 }
 0x3a6   :  { %v1347_v31 = vperm.slane %v1343_v23, %v2022_v14 }
 0x3a7   :  { %v1361_v33 = vsel %vm89_vm3, %v1360_v41, %v1652_v37  ;;  %v1309_v36 = vsel %vm89_vm3, %v1308_v28, %v1632_v27  ;;  %v2474_v41 = vpop.permute.xlu2 %1699 }
 0x3a8   :  { %v1365_v25 = vperm.slane %v1361_v33, %v2022_v14  ;;  %v1313_v40 = vperm.slane %v1309_v36, %v2022_v14  ;;  %v1697_v36 = vunpack.i.h.bf16 %v2445_v15  ;;  %v1367_v42 = vsel %vm89_vm3, %v1366_v17, %v1347_v31 }
 0x3a9   :  { %v1667_v17 = vunpack.i.h.bf16 %v2447_v16 }
 0x3aa   :  { %v1326_v50 = vrot.slane %v1313_v40, 4  ;;  %v1670_v51 = vpop.permute.xlu0 %1669  ;;  %v1720_v35 = vpop.permute.xlu1 %1719  ;;  %v1372_v12 = vrot.slane %v1365_v25, 4 }
 0x3ab   :  { %v1672_v59 = vunpack.i.h.bf16 %v1670_v51  ;;  %v1671_v45 = vunpack.i.l.bf16 %v1670_v51  ;;  %v1722_v13 = vunpack.i.h.bf16 %v1720_v35  ;;  %v1721_v60 = vunpack.i.l.bf16 %v1720_v35 }
 0x3ac   :  { %v1327_v58 = vsel %vm89_vm3, %v1326_v50, %v1307_v49  ;;  %v1373_v37 = vsel %vm89_vm3, %v1372_v12, %v1359_v19  ;;  %v2493_v51 = vperm.slane %v1367_v42, %v2037_v39 }
 0x3ad   :  { %v1314_v34 = vrot.slane %v1672_v59, 4  ;;  %v1321_v63 = vsel %vm89_vm3, %v1320_v48, %v1671_v45  ;;  %v1331_v27 = vperm.slane %v1327_v58, %v2037_v39  ;;  %v1394_v28 = vrot.slane %v1722_v13, 4 }
 0x3ae   :  { %v1325_v20 = vperm.slane %v1321_v63, %v2022_v14  ;;  %v1401_v30 = vsel %vm89_vm3, %v1400_v56, %v1721_v60  ;;  %v2482_v38 = vperm.slane %v1373_v37, %v2037_v39  ;;  %v1681_v48 = vunpack.i.l.bf16 %v2440_v8 }
 0x3af   :  { %v1315_v55 = vsel %vm89_vm3, %v1314_v34, %v1636_v4  ;;  %v1405_v25 = vperm.slane %v1401_v30, %v2022_v14  ;;  %v1340_v29 = vrot.slane %v1331_v27, 4  ;;  %v1395_v46 = vsel %vm89_vm3, %v1394_v28, %v1697_v36  ;;  %v2505_v4 = vpop.permute.xlu2 %1729 }
 0x3b0   :  { %v1319_v44 = vperm.slane %v1315_v55, %v2022_v14  ;;  %v1332_v24 = vrot.slane %v1325_v20, 4  ;;  %v1378_v35 = vrot.slane %v2482_v38, 4  ;;  %v1399_v53 = vperm.slane %v1395_v46, %v2022_v14 }
 0x3b1   :  { %v1412_v3 = vrot.slane %v1405_v25, 4  ;;  %v1676_v45 = vunpack.i.l.bf16 %v2442_v6  ;;  %v1388_v8 = vrot.slane %v1681_v48, 4  ;;  %v1627_v60 = vunpack.i.h.bf16 %v2421_v62 }
 0x3b2   :  { %v1685_v32 = vpop.permute.xlu0 %1684  ;;  %v1333_v33 = vsel %vm89_vm3, %v1332_v24, %v1319_v44  ;;  %v2497_v59 = vpop.permute.xlu1 %1724  ;;  %v2503_v0 = vsel %vm89_vm3, %v1378_v35, %v2493_v51  ;;  %v1626_v58 = vunpack.i.l.bf16 %v2421_v62  ;;  %v1662_v44 = vunpack.i.h.bf16 %v2426_v1 }
 0x3b3   :  { %v1337_v40 = vperm.slane %v1333_v33, %v2037_v39  ;;  %v1687_v15 = vunpack.i.h.bf16 %v1685_v32  ;;  %v1686_v13 = vunpack.i.l.bf16 %v1685_v32  ;;  %v1413_v19 = vsel %vm89_vm3, %v1412_v3, %v1399_v53 }
 0x3b4   :  { %v1200_v23 = vrot.slane %v1676_v45, 4  ;;  %v1661_v24 = vunpack.i.l.bf16 %v2426_v1  ;;  %v1702_v37 = vunpack.i.h.bf16 %v2474_v41  ;;  %v1417_v32 = vperm.slane %v1413_v19, %v2037_v39 }
 0x3b5   :  { %v1341_v49 = vsel %vm89_vm3, %v1337_v40, %v1340_v29  ;;  %v1188_v12 = vrot.slane %v1687_v15, 4  ;;  %v1338_v20 = vrot.slane %v1337_v40, 4  ;;  %v1228_v62 = vrot.slane %v1686_v13, 4 }
 0x3b6   :  { %v1763_v50 = vpack.i.bf16 %v1301_v2, %v1341_v49  ;;  %v1182_v26 = vrot.slane %v1627_v60, 4  ;;  %v1201_v1 = vsel %vm89_vm3, %v1200_v23, %v1662_v44  ;;  %v1701_v25 = vunpack.i.l.bf16 %v2474_v41 }
 0x3b7   :  { %v1189_v30 = vsel %vm89_vm3, %v1188_v12, %v1626_v58  ;;  %v2521_v36 = vsel %vm89_vm3, %v1338_v20, %v1331_v27  ;;  %v1222_v29 = vrot.slane %v1702_v37, 4  ;;  %v1418_v15 = vrot.slane %v1417_v32, 4 }
 0x3b8   :  { %1764 = vrot.lane.b32.xlu2 %v1763_v50, %s1820_s28  ;;  %v1183_v40 = vsel %vm89_vm3, %v1182_v26, %v1661_v24  ;;  %v1193_v42 = vperm.slane %v1189_v30, %v2022_v14  ;;  %v1229_v2 = vsel %vm89_vm3, %v1228_v62, %v1701_v25  ;;  %v1677_v50 = vunpack.i.h.bf16 %v2442_v6 }
 0x3b9   :  { %v1205_v11 = vperm.slane %v1201_v1, %v2022_v14  ;;  %v1380_v43 = vrot.slane %v2493_v51, 4  ;;  %v1233_v12 = vperm.slane %v1229_v2, %v2022_v14  ;;  %v1642_v20 = vunpack.i.h.bf16 %v2436_v7 }
 0x3ba   :  { %v1690_v61 = vpop.permute.xlu0 %1689  ;;  %v2532_v48 = vpop.permute.xlu1 %1739  ;;  %v1223_v13 = vsel %vm89_vm3, %v1222_v29, %v1677_v50  ;;  %v1641_v23 = vunpack.i.l.bf16 %v2436_v7  ;;  %v1727_v7 = vunpack.i.h.bf16 %v2497_v59  ;;  %v1726_v26 = vunpack.i.l.bf16 %v2497_v59 }
 0x3bb   :  { %v1692_v34 = vunpack.i.h.bf16 %v1690_v61  ;;  %v1691_v63 = vunpack.i.l.bf16 %v1690_v61  ;;  %v1741_v35 = vunpack.i.l.bf16 %v2532_v48  ;;  %v1206_v61 = vrot.slane %v1193_v42, 4 }
 0x3bc   :  { %v1381_v51 = vsel %vm89_vm3, %v2482_v38, %v1380_v43  ;;  %v1656_v29 = vunpack.i.l.bf16 %v2438_v10  ;;  %v1742_v42 = vunpack.i.h.bf16 %v2532_v48 }
 0x3bd   :  { %v1382_v56 = vrot.slane %v1692_v34, 4  ;;  %v1389_v55 = vsel %vm89_vm3, %v1388_v8, %v1691_v63  ;;  %v1187_v8 = vperm.slane %v1183_v40, %v2022_v14  ;;  %v1212_v63 = vrot.slane %v1205_v11, 4 }
 0x3be   :  { %v1393_v28 = vperm.slane %v1389_v55, %v2022_v14  ;;  %v1246_v55 = vrot.slane %v1233_v12, 4  ;;  %v1108_v40 = vrot.slane %v1641_v23, 4  ;;  %v1102_v11 = vrot.slane %v1727_v7, 4 }
 0x3bf   :  { %v1383_v31 = vsel %vm89_vm3, %v1382_v56, %v1667_v17  ;;  %v1657_v17 = vunpack.i.h.bf16 %v2438_v10  ;;  %v1227_v56 = vperm.slane %v1223_v13, %v2022_v14  ;;  %v1207_v38 = vsel %vm89_vm3, %v1206_v61, %v1187_v8 }
 0x3c0   :  { %v1387_v16 = vperm.slane %v1383_v31, %v2022_v14  ;;  %v1406_v33 = vrot.slane %v1393_v28, 4  ;;  %1779 = vrot.lane.b32.xlu2 %v1778_v21, %s1820_s28  ;;  %v1745_v21 = vpop.permute.xlu2 %1744  ;;  %v1211_v1 = vperm.slane %v1207_v38, %v2037_v39  ;;  %v1732_v10 = vunpack.i.h.bf16 %v2505_v4 }
 0x3c1   :  { %v1747_v60 = vunpack.i.h.bf16 %v1745_v21  ;;  %v1109_v48 = vsel %vm89_vm3, %v1108_v40, %v1726_v26  ;;  %v1160_v61 = vrot.slane %v1657_v17, 4  ;;  %v1142_v12 = vrot.slane %v1656_v29, 4 }
 0x3c2   :  { %v1407_v46 = vsel %vm89_vm3, %v1406_v33, %v1387_v16  ;;  %v1705_v27 = vpop.permute.xlu0 %1704  ;;  %v1103_v13 = vsel %vm89_vm3, %v1102_v11, %v1742_v42 }
 0x3c3   :  { %v1706_v49 = vunpack.i.l.bf16 %v1705_v27  ;;  %v1411_v41 = vperm.slane %v1407_v46, %v2037_v39  ;;  %v1707_v37 = vunpack.i.h.bf16 %v1705_v27  ;;  %v1234_v31 = vrot.slane %v1747_v60, 4 }
 0x3c4   :  { %v1247_v46 = vsel %vm89_vm3, %v1246_v55, %v1227_v56  ;;  %v1143_v60 = vsel %vm89_vm3, %v1142_v12, %v1732_v10  ;;  %v1107_v17 = vperm.slane %v1103_v13, %v2022_v14 }
 0x3c5   :  { %v1194_v53 = vrot.slane %v1706_v49, 4  ;;  %v1420_v3 = vrot.slane %v1411_v41, 4  ;;  %v2541_v45 = vsel %vm89_vm3, %v1418_v15, %v1411_v41  ;;  %v1235_v2 = vsel %vm89_vm3, %v1234_v31, %v1707_v37 }
 0x3c6   :  { %v1731_v15 = vunpack.i.l.bf16 %v2505_v4  ;;  %v1251_v43 = vperm.slane %v1247_v46, %v2037_v39  ;;  %v1113_v4 = vperm.slane %v1109_v48, %v2022_v14 }
 0x3c7   :  { %v1195_v6 = vsel %vm89_vm3, %v1194_v53, %v1741_v35  ;;  %v1421_v34 = vsel %vm89_vm3, %v1417_v32, %v1420_v3  ;;  %v1746_v32 = vunpack.i.l.bf16 %v1745_v21  ;;  %v1239_v35 = vperm.slane %v1235_v2, %v2022_v14 }
 0x3c8   :  { %v1199_v58 = vperm.slane %v1195_v6, %v2022_v14  ;;  %v1758_v19 = vpack.i.bf16 %v1381_v51, %v1421_v34  ;;  %v1750_v27 = vpop.permute.xlu2 %1749  ;;  %v1120_v51 = vrot.slane %v1731_v15, 4  ;;  %v1220_v34 = vrot.slane %v1211_v1, 4 }
 0x3c9   :  { %v1751_v21 = vunpack.i.l.bf16 %v1750_v27 }
 0x3ca   :  { %v1715_v44 = vpop.permute.xlu0 %1714  ;;  %1759 = vrot.lane.b32.xlu1 %v1758_v19, %s1820_s28  ;;  %v1213_v24 = vsel %vm89_vm3, %v1212_v63, %v1199_v58  ;;  %v1752_v58 = vunpack.i.h.bf16 %v1750_v27 }
 0x3cb   :  { %v1717_v28 = vunpack.i.h.bf16 %v1715_v44  ;;  %v1716_v30 = vunpack.i.l.bf16 %v1715_v44  ;;  %v1217_v62 = vperm.slane %v1213_v24, %v2037_v39  ;;  %v1121_v23 = vsel %vm89_vm3, %v1120_v51, %v1751_v21  ;;  %v1483_v51 = vld [vmem:[%s2661_s4] sm:$0xf] }
 0x3cc   :  { %v1125_v7 = vperm.slane %v1121_v23, %v2022_v14 }
 0x3cd   :  { %v1148_v16 = vrot.slane %v1717_v28, 4  ;;  %v1240_v33 = vrot.slane %v1716_v30, 4  ;;  %v1218_v25 = vrot.slane %v1217_v62, 4  ;;  %v1221_v55 = vsel %vm89_vm3, %v1217_v62, %v1220_v34 }
 0x3ce   :  { %v1147_v28 = vperm.slane %v1143_v60, %v2022_v14  ;;  %v1126_v30 = vrot.slane %v1113_v4, 4 }
 0x3cf   :  { %v1149_v49 = vsel %vm89_vm3, %v1148_v16, %v1642_v20  ;;  %v1241_v41 = vsel %vm89_vm3, %v1240_v33, %v1746_v32  ;;  %v2569_v59 = vsel %vm89_vm3, %v1218_v25, %v1211_v1  ;;  %v1260_v20 = vrot.slane %v1251_v43, 4 }
 0x3d0   :  { %v1245_v50 = vperm.slane %v1241_v41, %v2022_v14  ;;  %v1153_v53 = vperm.slane %v1149_v49, %v2022_v14  ;;  %v1127_v26 = vsel %vm89_vm3, %v1126_v30, %v1107_v17  ;;  %v1114_v1 = vrot.slane %v1752_v58, 4 }
 0x3d1   :  { %v1131_v27 = vperm.slane %v1127_v26, %v2037_v39  ;;  %v1132_v49 = vrot.slane %v1125_v7, 4 }
 0x3d2   :  { %v1252_v3 = vrot.slane %v1245_v50, 4  ;;  %v1735_v8 = vpop.permute.xlu0 %1734  ;;  %v1166_v56 = vrot.slane %v1153_v53, 4 }
 0x3d3   :  { %v1736_v6 = vunpack.i.l.bf16 %v1735_v8  ;;  %v1737_v44 = vunpack.i.h.bf16 %v1735_v8 }
 0x3d4   :  { %v1253_v63 = vsel %vm89_vm3, %v1252_v3, %v1239_v35  ;;  %v1167_v62 = vsel %vm89_vm3, %v1166_v56, %v1147_v28 }
 0x3d5   :  { %v1257_v19 = vperm.slane %v1253_v63, %v2037_v39  ;;  %v1161_v38 = vsel %vm89_vm3, %v1160_v61, %v1736_v6  ;;  %v1154_v25 = vrot.slane %v1737_v44, 4  ;;  %v1171_v2 = vperm.slane %v1167_v62, %v2037_v39 }
 0x3d6   :  { %v1165_v16 = vperm.slane %v1161_v38, %v2022_v14 }
 0x3d7   :  { %v1261_v24 = vsel %vm89_vm3, %v1257_v19, %v1260_v20  ;;  %v1258_v37 = vrot.slane %v1257_v19, 4  ;;  %v1180_v35 = vrot.slane %v1171_v2, 4 }
 0x3d8   :  { %v1768_v31 = vpack.i.bf16 %v1221_v55, %v1261_v24  ;;  %v1172_v41 = vrot.slane %v1165_v16, 4  ;;  %v1482_v16 = vld [vmem:[%s2660_s3] sm:$0xf]  ;;  %s1823_s3 = smov [#allocation4]  }
 0x3d9   :  { %v1259_v32 = vsel %vm89_vm3, %v1258_v37, %v1251_v43  ;;  %v1140_v43 = vrot.slane %v1131_v27, 4  ;;  %s1551_s22 = sshll.u32 %s1823_s3, 4  ;;  %s1552_s22 = int_to_ptr.vmem [resolvable:$true] %s1551_s22 }
 0x3da   :  { %v1755_v33 = vpop.permute.xlu0 %1754  ;;  %1769 = vrot.lane.b32.xlu0 %v1768_v31, %s1820_s28 }
 0x3db   :  { %v1757_v40 = vunpack.i.h.bf16 %v1755_v33  ;;  %v1756_v29 = vunpack.i.l.bf16 %v1755_v33 }
 0x3dd   :  { %v1115_v42 = vsel %vm89_vm3, %v1114_v1, %v1757_v40  ;;  %v1155_v46 = vsel %vm89_vm3, %v1154_v25, %v1756_v29 }
 0x3de   :  { %v1119_v15 = vperm.slane %v1115_v42, %v2022_v14  ;;  %v1159_v50 = vperm.slane %v1155_v46, %v2022_v14 }
 0x3e0   :  { %v1133_v10 = vsel %vm89_vm3, %v1132_v49, %v1119_v15  ;;  %v1173_v11 = vsel %vm89_vm3, %v1172_v41, %v1159_v50 }
 0x3e1   :  { %v1137_v48 = vperm.slane %v1133_v10, %v2037_v39  ;;  %v1177_v21 = vperm.slane %v1173_v11, %v2037_v39 }
 0x3e2   :  { %1784 = vrot.lane.b32.xlu0 %v1783_v57, %s1820_s28 }
 0x3e3   :  { %v1141_v53 = vsel %vm89_vm3, %v1137_v48, %v1140_v43  ;;  %v1181_v3 = vsel %vm89_vm3, %v1177_v21, %v1180_v35  ;;  %v1178_v8 = vrot.slane %v1177_v21, 4  ;;  %v1138_v61 = vrot.slane %v1137_v48, 4 }
 0x3e4   :  { %v1773_v12 = vpack.i.bf16 %v1141_v53, %v1181_v3 }
 0x3e5   :  { %v1179_v13 = vsel %vm89_vm3, %v1178_v8, %v1171_v2  ;;  %v1139_v6 = vsel %vm89_vm3, %v1138_v61, %v1131_v27 }
 0x3e6   :  { %1774 = vrot.lane.b32.xlu1 %v1773_v12, %s1820_s28 }
 0x3ee   :  { %1486 = vperm.xlu1 %1596, %v1483_v51  }
 0x412   :  { %v1765_v47 = vpop.permute.xlu2 %1764 }
 0x413   :  { %v1766_v34 = vunpack.i.l.bf16 %v1765_v47  ;;  %v1767_v60 = vunpack.i.h.bf16 %v1765_v47 }
 0x415   :  { %v1479_v19 = vsel %vm157_vm5, %v2521_v36, %v1766_v34  ;;  %v1478_v20 = vsel %vm157_vm5, %v2434_v5, %v1767_v60 }
 0x43c   :  { %v1760_v54 = vpop.permute.xlu1 %1759 }
 0x43d   :  { %v1762_v57 = vunpack.i.h.bf16 %v1760_v54  ;;  %v1761_v4 = vunpack.i.l.bf16 %v1760_v54 }
 0x43f   :  { %v1481_v63 = vsel %vm157_vm5, %v2541_v45, %v1761_v4  ;;  %v1480_v58 = vsel %vm157_vm5, %v2503_v0, %v1762_v57  ;;  %v1780_v0 = vpop.permute.xlu2 %1779 }
 0x440   :  { %1497 = vmatpush.msra.mxu1 %v1481_v63  ;;  %v1781_v36 = vunpack.i.l.bf16 %v1780_v0  ;;  %v1782_v5 = vunpack.i.h.bf16 %v1780_v0 }
 0x442   :  { %1498 = vmatpush.msra.mxu1 %v1480_v58  ;;  %v1472_v7 = vsel %vm157_vm5, %v2315_v9, %v1782_v5 }
 0x444   :  { %1499 = vmatpush.msra.mxu1 %v1479_v19 }
 0x446   :  { %1500 = vmatpush.msra.mxu1 %v1478_v20 }
 0x44c   :  { %v1770_v23 = vpop.permute.xlu0 %1769 }
 0x44d   :  { %v1772_v17 = vunpack.i.h.bf16 %v1770_v23  ;;  %v1771_v56 = vunpack.i.l.bf16 %v1770_v23 }
 0x44f   :  { %v1477_v55 = vsel %vm157_vm5, %v1259_v32, %v1771_v56  ;;  %v1476_v45 = vsel %vm157_vm5, %v2569_v59, %v1772_v17  ;;  %v1473_v32 = vsel %vm157_vm5, %v2383_v22, %v1781_v36 }
 0x450   :  { %1501 = vmatpush.msra.mxu1 %v1477_v55 }
 0x452   :  { %1502 = vmatpush.msra.mxu1 %v1476_v45 }
 0x454   :  { %v1785_v28 = vpop.permute.xlu0 %1784 }
 0x455   :  { %v1786_v31 = vunpack.i.l.bf16 %v1785_v28  ;;  %v1787_v59 = vunpack.i.h.bf16 %v1785_v28 }
 0x457   :  { %v1471_v26 = vsel %vm157_vm5, %v2352_v18, %v1786_v31  ;;  %v1470_v33 = vsel %vm157_vm5, %v2294_v52, %v1787_v59 }
 0x458   :  { %v1775_v44 = vpop.permute.xlu1 %1774 }
 0x459   :  { %v1777_v38 = vunpack.i.h.bf16 %v1775_v44  ;;  %v1776_v24 = vunpack.i.l.bf16 %v1775_v44 }
 0x45b   :  { %v1475_v37 = vsel %vm157_vm5, %v1179_v13, %v1776_v24  ;;  %v1474_v30 = vsel %vm157_vm5, %v1139_v6, %v1777_v38 }
 0x45c   :  { %1503 = vmatpush.msra.mxu1 %v1475_v37 }
 0x45e   :  { %1504 = vmatpush.msra.mxu1 %v1474_v30 }
 0x460   :  { %1505 = vmatpush.msra.mxu1 %v1473_v32  ;;  %v1487_v22 = vpop.permute.xlu1 %1486 }
 0x462   :  { %1506 = vmatpush.msra.mxu1 %v1472_v7 }
 0x464   :  { %1507 = vmatpush.msra.mxu1 %v1471_v26 }
 0x466   :  { %1508 = vmatpush.msra.mxu1 %v1470_v33 }
 0x467   :  { %1570 = vmatmul.msk.f32.vlgmr.msra.gmra.mxu1 %vm1489_vm7, %v1482_v16 }
 0x4e4   :  { %v1510_v62 = vpop.f32.mrf.mxu1 }
 0x4e5   :  { %v1511_v1 = vadd.f32 %v1510_v62, %v1487_v22 }
 0x4e7   :  { %v1513_v25 = vmax.f32 %v1511_v1, 0.0 }
 0x4e9   :  { %1515 = vrot.lane.b32.xlu2 %v1513_v25, %s1822_s19  ;;  %v1520_v9 = vperm.slane %v1513_v25, %v2022_v14 }
 0x4eb   :  { %v1528_v40 = vrot.slane %v1520_v9, 4 }
 0x543   :  { %v1516_v18 = vpop.permute.xlu2 %1515 }
 0x544   :  { %v1525_v29 = vperm.slane %v1516_v18, %v2022_v14 }
 0x546   :  { %v1526_v42 = vrot.slane %v1525_v29, 4  ;;  %v1529_v46 = vsel %vm89_vm3, %v1525_v29, %v1528_v40 }
 0x547   :  { %v1537_v52 = vperm.slane %v1529_v46, %v2037_v39 }
 0x548   :  { %v1527_v27 = vsel %vm89_vm3, %v1526_v42, %v1520_v9 }
 0x549   :  { %v1533_v2 = vperm.slane %v1527_v27, %v2037_v39  ;;  %v1540_v49 = vrot.slane %v1537_v52, 4  ;;  %1545 = vst.msk [vmem:[#allocation4 + $0x4] sm:$0x3] %vm1542_vm8, %v1537_v52 }
 0x54b   :  { %v1538_v14 = vrot.slane %v1533_v2, 4  ;;  %v1541_v41 = vsel %vm89_vm3, 0.0, %v1540_v49  ;;  %1543 = vst.msk [vmem:[#allocation4] sm:$0x3] %vm1542_vm8, %v1533_v2 }
 0x54c   :  { %1546 = vst.msk [vmem:[#allocation4 + $0x6] sm:$0x3] %vm1542_vm8, %v1541_v41 }
 0x54d   :  { %v1539_v15 = vsel %vm89_vm3, 0.0, %v1538_v14 }
 0x54e   :  { %1544 = vst.msk [vmem:[#allocation4 + $0x2] sm:$0x3] %vm1542_vm8, %v1539_v15 }
 0x54f   :  { %1559 = dma.vmem_to_hbm [thread:$0]  %s1552_s22, 128, %s1554_s25, [#allocation5], %s1824_s26, %s1824_s26, %s1825_s5  }
 0x550   :  { %1812 = dma.done.wait [#allocation5], 128  }
 0x551   :  { %1813 = vsyncadd [#allocation5], 4294967168 }
 0x552   :  { %1564 = vsyncpa [#allocation5], 1 }

</bundles_post_ra>
